<compile_context>
chip_gen: v7x
topology: tpu7x:2x2x1
jax: 0.10.0
libtpu: 0.0.40
codegen_flags: <defaults>
</compile_context>

<pallas_src>
import jax
import jax.numpy as jnp
from jax.experimental import pallas as pl
from jax.experimental.pallas import tpu as pltpu


# ----------------------------------------------------------------------------
# Kernel
# ----------------------------------------------------------------------------
def _kernel(h_ref, ctx_ref, mask_ref, win_t_ref, woc_t_ref, woh_t_ref,
            htilde_ref, wctx_ref, attn_ref, logit_ref):
    h = h_ref[...].astype(jnp.float32)               # (tn, H)
    ctx = ctx_ref[...].astype(jnp.float32)           # (tn, S, F)

    # target = linear_in(h): (tn, F)                               -- MXU
    target = jnp.dot(h, win_t_ref[...], preferred_element_type=jnp.float32)

    # logit[n, s] = <ctx[n, s, :], target[n, :]>   (contract F)    -- VPU + reduce
    logits = jnp.sum(ctx * target[:, None, :], axis=-1)            # (tn, S)
    logits = jnp.where(mask_ref[...] != 0, -jnp.inf, logits)
    logit_ref[...] = logits

    # softmax along S
    m = jnp.max(logits, axis=-1, keepdims=True)
    e = jnp.exp(logits - m)
    denom = jnp.sum(e, axis=-1, keepdims=True)
    attn = e / denom                                               # (tn, S)
    attn_ref[...] = attn

    # weighted[n, f] = sum_s attn[n, s] * ctx[n, s, f]   (contract S)
    weighted = jnp.sum(attn[:, :, None] * ctx, axis=1)             # (tn, F)
    wctx_ref[...] = weighted

    # h_tilde = tanh(linear_out(cat(weighted, h)))                 -- MXU + tanh
    htilde_ref[...] = jnp.tanh(
        jnp.dot(weighted, woc_t_ref[...], preferred_element_type=jnp.float32)
        + jnp.dot(h, woh_t_ref[...], preferred_element_type=jnp.float32))


# ----------------------------------------------------------------------------
# Tile-size / VMEM helpers
# ----------------------------------------------------------------------------
def _round_up(x, m):
    return (x + m - 1) // m * m


def _vmem_estimate(tn, s, f, h):
    """Rough per-call VMEM footprint (bytes, f32, double-buffered) for a tile."""
    ctx_b = 2 * tn * s * f * 4
    h_b = 2 * tn * h * 4
    mask_b = 2 * tn * s * 4
    out_b = 2 * tn * (h + f + 2 * s) * 4
    w_b = 2 * (h * f + f * h + h * h) * 4
    return ctx_b + h_b + mask_b + out_b + w_b


def _choose_tn(n, s, f, h):
    """Largest row tile whose multi-buffered blocks fit a safe VMEM budget."""
    budget = 48 * 1024 * 1024
    tn = 8
    for cand in (512, 256, 128, 64, 32, 16, 8):
        if _vmem_estimate(cand, s, f, h) <= budget:
            tn = cand
            break
    return min(tn, _round_up(n, 8))   # single tile for small N


# ----------------------------------------------------------------------------
# Public wrapper (mirrors the PyTorch SoftDotAttention.forward)
# ----------------------------------------------------------------------------
def soft_dot_attention(h, context, w_in, w_out, mask=None,
                       output_tilde=True, output_prob=True, tn=None):
    """SoftDotAttention forward as a Pallas TPU kernel.

    h:       (N, H)      query (query_dim = H)
    context: (N, S, F)   context (ctx_dim = F)
    mask:    (N, S) or None; nonzero / True entries are masked (-inf logit)
    w_in:    (F, H)      == PyTorch linear_in.weight   (Linear(H -> F), no bias)
    w_out:   (H, F + H)  == PyTorch linear_out.weight  (Linear(F+H -> H), no bias,
                            input ordering = cat(weighted_context, h))
    Returns the same tuple as the PyTorch module for the given flags.
    """
    n, hdim = h.shape
    n2, s, f = context.shape
    assert n == n2, (n, n2)
    assert w_in.shape == (f, hdim), w_in.shape
    assert w_out.shape == (hdim, f + hdim), w_out.shape

    if tn is None:
        tn = _choose_tn(n, s, f, hdim)
    n_pad = _round_up(n, tn)
    n_tiles = n_pad // tn

    # Weights: transpose once; they stay resident across the whole grid.
    win_t = w_in.T.astype(jnp.float32)                # (H, F)
    woc_t = w_out[:, :f].T.astype(jnp.float32)        # (F, H)  weighted-context half
    woh_t = w_out[:, f:].T.astype(jnp.float32)        # (H, H)  h half

    hc = h.astype(jnp.float32)
    ctxc = context.astype(jnp.float32)
    mask_i = (jnp.zeros((n, s), jnp.int32) if mask is None
              else mask.astype(jnp.int32))
    if n_pad != n:
        pad = n_pad - n
        hc = jnp.pad(hc, ((0, pad), (0, 0)))
        ctxc = jnp.pad(ctxc, ((0, pad), (0, 0), (0, 0)))
        mask_i = jnp.pad(mask_i, ((0, pad), (0, 0)))

    vmem_limit = int(min(max(_vmem_estimate(tn, s, f, hdim) + (8 << 20),
                             32 << 20),
                         64 << 20))

    h_tilde, weighted, attn, logits = pl.pallas_call(
        _kernel,
        out_shape=(jax.ShapeDtypeStruct((n_pad, hdim), jnp.float32),   # h_tilde
                   jax.ShapeDtypeStruct((n_pad, f), jnp.float32),      # weighted
                   jax.ShapeDtypeStruct((n_pad, s), jnp.float32),      # attn
                   jax.ShapeDtypeStruct((n_pad, s), jnp.float32)),     # logits
        grid_spec=pltpu.PrefetchScalarGridSpec(
            num_scalar_prefetch=0,
            grid=(n_tiles,),
            in_specs=[
                pl.BlockSpec((tn, hdim), lambda i: (i, 0)),            # h
                pl.BlockSpec((tn, s, f), lambda i: (i, 0, 0)),         # context
                pl.BlockSpec((tn, s), lambda i: (i, 0)),               # mask
                pl.BlockSpec((hdim, f), lambda i: (0, 0)),             # W_in^T
                pl.BlockSpec((f, hdim), lambda i: (0, 0)),             # W_out ctx half
                pl.BlockSpec((hdim, hdim), lambda i: (0, 0)),          # W_out h half
            ],
            out_specs=[
                pl.BlockSpec((tn, hdim), lambda i: (i, 0)),
                pl.BlockSpec((tn, f), lambda i: (i, 0)),
                pl.BlockSpec((tn, s), lambda i: (i, 0)),
                pl.BlockSpec((tn, s), lambda i: (i, 0)),
            ]),
        compiler_params=pltpu.CompilerParams(
            dimension_semantics=("parallel",),   # rows independent
            vmem_limit_bytes=vmem_limit),
    )(hc, ctxc, mask_i, win_t, woc_t, woh_t)

    h_tilde, weighted = h_tilde[:n], weighted[:n]
    attn_out = attn[:n] if output_prob else logits[:n]
    if output_tilde:
        return h_tilde, weighted, attn_out
    return weighted, attn_out


# ----------------------------------------------------------------------------
# Pure-JAX reference (same f32 math, for the check)
# ----------------------------------------------------------------------------
def soft_dot_attention_ref(h, context, w_in, w_out, mask=None):
    f = context.shape[-1]
    h = h.astype(jnp.float32)
    ctx = context.astype(jnp.float32)
    target = jnp.dot(h, w_in.T.astype(jnp.float32),
                     preferred_element_type=jnp.float32)
    logits = jnp.sum(ctx * target[:, None, :], axis=-1)
    if mask is not None:
        logits = jnp.where(mask, -jnp.inf, logits)
    attn = jax.nn.softmax(logits, axis=-1)
    weighted = jnp.sum(attn[:, :, None] * ctx, axis=1)
    h_tilde = jnp.tanh(
        jnp.dot(weighted, w_out[:, :f].T.astype(jnp.float32),
                preferred_element_type=jnp.float32)
        + jnp.dot(h, w_out[:, f:].T.astype(jnp.float32),
                  preferred_element_type=jnp.float32))
    return h_tilde, weighted, attn, logits


# ----------------------------------------------------------------------------
if __name__ == "__main__":
    # h: (batch, query_dim), context: (batch, seq_len, ctx_dim)
    # query_dim = ctx_dim = 128 keeps the (tn, H)/(tn, F) output stores lane-dense;
    # batch = 50 exercises the pad-to-tile path.
    B, S, F, H = 50, 8, 128, 128

    key = jax.random.PRNGKey(0)
    k_h, k_c, k_wi, k_wo = jax.random.split(key, 4)
    h = jax.random.normal(k_h, (B, H), jnp.float32)
    context = jax.random.normal(k_c, (B, S, F), jnp.float32)
    w_in = 0.05 * jax.random.normal(k_wi, (F, H), jnp.float32)       # linear_in.weight
    w_out = 0.05 * jax.random.normal(k_wo, (H, F + H), jnp.float32)  # linear_out.weight

    # mask the last 3 context slots for the first half of the batch
    mask = (jnp.arange(S)[None, :] >= S - 3) & (jnp.arange(B)[:, None] < B // 2)

    tol = dict(atol=2e-3, rtol=2e-3)

    # ---- no mask -----------------------------------------------------------
    h_tilde, wctx, attn = soft_dot_attention(h, context, w_in, w_out)
    jax.block_until_ready((h_tilde, wctx, attn))
    r_ht, r_wc, r_at, r_lg = soft_dot_attention_ref(h, context, w_in, w_out)
    for a, b in ((h_tilde, r_ht), (wctx, r_wc), (attn, r_at)):
        assert a.shape == b.shape, (a.shape, b.shape)
        assert jnp.allclose(a, b, **tol), float(jnp.max(jnp.abs(a - b)))

    # ---- output_tilde=False, output_prob=False (returns masked logits) ------
    wctx2, logit2 = soft_dot_attention(h, context, w_in, w_out,
                                       output_tilde=False, output_prob=False)
    jax.block_until_ready((wctx2, logit2))
    assert jnp.allclose(wctx2, r_wc, **tol), float(jnp.max(jnp.abs(wctx2 - r_wc)))
    assert jnp.allclose(logit2, r_lg, **tol), float(jnp.max(jnp.abs(logit2 - r_lg)))

    # ---- with mask ----------------------------------------------------------
    h_tilde_m, wctx_m, attn_m = soft_dot_attention(h, context, w_in, w_out, mask=mask)
    jax.block_until_ready((h_tilde_m, wctx_m, attn_m))
    r_htm, r_wcm, r_atm, _ = soft_dot_attention_ref(h, context, w_in, w_out, mask=mask)
    assert jnp.allclose(h_tilde_m, r_htm, **tol), float(jnp.max(jnp.abs(h_tilde_m - r_htm)))
    assert jnp.allclose(wctx_m, r_wcm, **tol), float(jnp.max(jnp.abs(wctx_m - r_wcm)))
    assert jnp.allclose(attn_m, r_atm, **tol), float(jnp.max(jnp.abs(attn_m - r_atm)))
    assert float(jnp.max(jnp.abs(attn_m[:B // 2, S - 3:]))) < 1e-6   # masked -> 0 prob

    print("KERNEL_OK")
</pallas_src>

<mosaic_0001>
module attributes {stable_mosaic.version = 11 : i64} {
  func.func @_kernel(%arg0: i32, %arg1: memref<56x128xf32, #tpu.memory_space<vmem>>, %arg2: memref<56x8x128xf32, #tpu.memory_space<vmem>>, %arg3: memref<56x8xi32, #tpu.memory_space<vmem>>, %arg4: memref<128x128xf32, #tpu.memory_space<vmem>>, %arg5: memref<128x128xf32, #tpu.memory_space<vmem>>, %arg6: memref<128x128xf32, #tpu.memory_space<vmem>>, %arg7: memref<56x128xf32, #tpu.memory_space<vmem>>, %arg8: memref<56x128xf32, #tpu.memory_space<vmem>>, %arg9: memref<56x8xf32, #tpu.memory_space<vmem>>, %arg10: memref<56x8xf32, #tpu.memory_space<vmem>>) attributes {dimension_semantics = [#tpu.dimension_semantics<parallel>], iteration_bounds = array<i64: 1>, scalar_prefetch = 0 : i64, scratch_operands = 0 : i64, tpu.core_type = #tpu.core_type<tc>, window_params = [{transform_indices = @transform_0, window_bounds = array<i64: 56, 128>}, {transform_indices = @transform_1, window_bounds = array<i64: 56, 8, 128>}, {transform_indices = @transform_2, window_bounds = array<i64: 56, 8>}, {pipeline_mode = #tpu.pipeline_mode<synchronous>, transform_indices = @transform_3, window_bounds = array<i64: 128, 128>}, {pipeline_mode = #tpu.pipeline_mode<synchronous>, transform_indices = @transform_4, window_bounds = array<i64: 128, 128>}, {pipeline_mode = #tpu.pipeline_mode<synchronous>, transform_indices = @transform_5, window_bounds = array<i64: 128, 128>}, {transform_indices = @transform_6, window_bounds = array<i64: 56, 128>}, {transform_indices = @transform_7, window_bounds = array<i64: 56, 128>}, {transform_indices = @transform_8, window_bounds = array<i64: 56, 8>}, {transform_indices = @transform_9, window_bounds = array<i64: 56, 8>}]} {
    %c0 = arith.constant 0 : index
    %c0_0 = arith.constant 0 : index
    %0 = vector.load %arg1[%c0, %c0_0] : memref<56x128xf32, #tpu.memory_space<vmem>>, vector<56x128xf32>
    %c0_1 = arith.constant 0 : index
    %c0_2 = arith.constant 0 : index
    %c0_3 = arith.constant 0 : index
    %1 = vector.load %arg2[%c0_1, %c0_2, %c0_3] : memref<56x8x128xf32, #tpu.memory_space<vmem>>, vector<56x8x128xf32>
    %c0_4 = arith.constant 0 : index
    %c0_5 = arith.constant 0 : index
    %2 = vector.load %arg4[%c0_4, %c0_5] : memref<128x128xf32, #tpu.memory_space<vmem>>, vector<128x128xf32>
    %cst = arith.constant dense<0.000000e+00> : vector<56x128xf32>
    %3 = tpu.matmul %0, %2, %cst {dimension_numbers = #tpu.dot_dimension_numbers<[1], [0], [0], [1], [0, 0, 1, 1], [], []>} : vector<56x128xf32>, vector<128x128xf32>, vector<56x128xf32> -> vector<56x128xf32>
    %4 = vector.shape_cast %3 : vector<56x128xf32> to vector<56x1x128xf32>
    %5 = vector.broadcast %4 : vector<56x1x128xf32> to vector<56x8x128xf32>
    %6 = arith.mulf %1, %5 : vector<56x8x128xf32>
    %cst_6 = arith.constant dense<0.000000e+00> : vector<56x8xf32>
    %7 = vector.multi_reduction <add>, %6, %cst_6 [2] : vector<56x8x128xf32> to vector<56x8xf32>
    %c0_7 = arith.constant 0 : index
    %c0_8 = arith.constant 0 : index
    %8 = vector.load %arg3[%c0_7, %c0_8] : memref<56x8xi32, #tpu.memory_space<vmem>>, vector<56x8xi32>
    %c0_i32 = arith.constant 0 : i32
    %9 = vector.broadcast %c0_i32 : i32 to vector<56x8xi32>
    %10 = arith.cmpi ne, %8, %9 : vector<56x8xi32>
    %cst_9 = arith.constant 0xFF800000 : f32
    %11 = vector.broadcast %cst_9 : f32 to vector<56x8xf32>
    %12 = arith.select %10, %11, %7 : vector<56x8xi1>, vector<56x8xf32>
    %c0_10 = arith.constant 0 : index
    %c0_11 = arith.constant 0 : index
    %13 = vector.load %arg10[%c0_10, %c0_11] : memref<56x8xf32, #tpu.memory_space<vmem>>, vector<56x8xf32>
    tpu.vector_store %arg10[%c0_10, %c0_11], %12 {strides = array<i32>} : memref<56x8xf32, #tpu.memory_space<vmem>>, vector<56x8xf32>,
    %cst_12 = arith.constant dense<0xFF800000> : vector<56xf32>
    %14 = vector.multi_reduction <maximumf>, %12, %cst_12 [1] : vector<56x8xf32> to vector<56xf32>
    %15 = vector.shape_cast %14 : vector<56xf32> to vector<56x1xf32>
    %16 = vector.broadcast %15 : vector<56x1xf32> to vector<56x8xf32>
    %17 = arith.subf %12, %16 : vector<56x8xf32>
    %18 = math.exp %17 : vector<56x8xf32>
    %cst_13 = arith.constant dense<0.000000e+00> : vector<56xf32>
    %19 = vector.multi_reduction <add>, %18, %cst_13 [1] : vector<56x8xf32> to vector<56xf32>
    %20 = vector.shape_cast %19 : vector<56xf32> to vector<56x1xf32>
    %21 = vector.broadcast %20 : vector<56x1xf32> to vector<56x8xf32>
    %22 = arith.divf %18, %21 : vector<56x8xf32>
    %c0_14 = arith.constant 0 : index
    %c0_15 = arith.constant 0 : index
    %23 = vector.load %arg9[%c0_14, %c0_15] : memref<56x8xf32, #tpu.memory_space<vmem>>, vector<56x8xf32>
    tpu.vector_store %arg9[%c0_14, %c0_15], %22 {strides = array<i32>} : memref<56x8xf32, #tpu.memory_space<vmem>>, vector<56x8xf32>,
    %24 = vector.shape_cast %22 : vector<56x8xf32> to vector<56x8x1xf32>
    %25 = vector.broadcast %24 : vector<56x8x1xf32> to vector<56x8x128xf32>
    %26 = arith.mulf %25, %1 : vector<56x8x128xf32>
    %cst_16 = arith.constant dense<0.000000e+00> : vector<56x128xf32>
    %27 = vector.multi_reduction <add>, %26, %cst_16 [1] : vector<56x8x128xf32> to vector<56x128xf32>
    %c0_17 = arith.constant 0 : index
    %c0_18 = arith.constant 0 : index
    %28 = vector.load %arg8[%c0_17, %c0_18] : memref<56x128xf32, #tpu.memory_space<vmem>>, vector<56x128xf32>
    tpu.vector_store %arg8[%c0_17, %c0_18], %27 {strides = array<i32>} : memref<56x128xf32, #tpu.memory_space<vmem>>, vector<56x128xf32>,
    %c0_19 = arith.constant 0 : index
    %c0_20 = arith.constant 0 : index
    %29 = vector.load %arg5[%c0_19, %c0_20] : memref<128x128xf32, #tpu.memory_space<vmem>>, vector<128x128xf32>
    %cst_21 = arith.constant dense<0.000000e+00> : vector<56x128xf32>
    %30 = tpu.matmul %27, %29, %cst_21 {dimension_numbers = #tpu.dot_dimension_numbers<[1], [0], [0], [1], [0, 0, 1, 1], [], []>} : vector<56x128xf32>, vector<128x128xf32>, vector<56x128xf32> -> vector<56x128xf32>
    %c0_22 = arith.constant 0 : index
    %c0_23 = arith.constant 0 : index
    %31 = vector.load %arg6[%c0_22, %c0_23] : memref<128x128xf32, #tpu.memory_space<vmem>>, vector<128x128xf32>
    %cst_24 = arith.constant dense<0.000000e+00> : vector<56x128xf32>
    %32 = tpu.matmul %0, %31, %cst_24 {dimension_numbers = #tpu.dot_dimension_numbers<[1], [0], [0], [1], [0, 0, 1, 1], [], []>} : vector<56x128xf32>, vector<128x128xf32>, vector<56x128xf32> -> vector<56x128xf32>
    %33 = arith.addf %30, %32 : vector<56x128xf32>
    %34 = math.tanh %33 : vector<56x128xf32>
    %c0_25 = arith.constant 0 : index
    %c0_26 = arith.constant 0 : index
    %35 = vector.load %arg7[%c0_25, %c0_26] : memref<56x128xf32, #tpu.memory_space<vmem>>, vector<56x128xf32>
    tpu.vector_store %arg7[%c0_25, %c0_26], %34 {strides = array<i32>} : memref<56x128xf32, #tpu.memory_space<vmem>>, vector<56x128xf32>,
    return
  }
  func.func @transform_0(%arg0: i32) -> (i32, i32) {
    %c0_i32 = arith.constant 0 : i32
    %c0_i32_0 = arith.constant 0 : i32
    return %arg0, %c0_i32 : i32, i32
  }
  func.func @transform_1(%arg0: i32) -> (i32, i32, i32) {
    %c0_i32 = arith.constant 0 : i32
    %c0_i32_0 = arith.constant 0 : i32
    %c0_i32_1 = arith.constant 0 : i32
    return %arg0, %c0_i32, %c0_i32_0 : i32, i32, i32
  }
  func.func @transform_2(%arg0: i32) -> (i32, i32) {
    %c0_i32 = arith.constant 0 : i32
    %c0_i32_0 = arith.constant 0 : i32
    return %arg0, %c0_i32 : i32, i32
  }
  func.func @transform_3(%arg0: i32) -> (i32, i32) {
    %c0_i32 = arith.constant 0 : i32
    %c0_i32_0 = arith.constant 0 : i32
    %c0_i32_1 = arith.constant 0 : i32
    return %c0_i32, %c0_i32_0 : i32, i32
  }
  func.func @transform_4(%arg0: i32) -> (i32, i32) {
    %c0_i32 = arith.constant 0 : i32
    %c0_i32_0 = arith.constant 0 : i32
    %c0_i32_1 = arith.constant 0 : i32
    return %c0_i32, %c0_i32_0 : i32, i32
  }
  func.func @transform_5(%arg0: i32) -> (i32, i32) {
    %c0_i32 = arith.constant 0 : i32
    %c0_i32_0 = arith.constant 0 : i32
    %c0_i32_1 = arith.constant 0 : i32
    return %c0_i32, %c0_i32_0 : i32, i32
  }
  func.func @transform_6(%arg0: i32) -> (i32, i32) {
    %c0_i32 = arith.constant 0 : i32
    %c0_i32_0 = arith.constant 0 : i32
    return %arg0, %c0_i32 : i32, i32
  }
  func.func @transform_7(%arg0: i32) -> (i32, i32) {
    %c0_i32 = arith.constant 0 : i32
    %c0_i32_0 = arith.constant 0 : i32
    return %arg0, %c0_i32 : i32, i32
  }
  func.func @transform_8(%arg0: i32) -> (i32, i32) {
    %c0_i32 = arith.constant 0 : i32
    %c0_i32_0 = arith.constant 0 : i32
    return %arg0, %c0_i32 : i32, i32
  }
  func.func @transform_9(%arg0: i32) -> (i32, i32) {
    %c0_i32 = arith.constant 0 : i32
    %c0_i32_0 = arith.constant 0 : i32
    return %arg0, %c0_i32 : i32, i32
  }
}

</mosaic_0001>

<bundles_post_ra>
// kernel: tpu_custom_call.1
= control target key start
LH: loop header
LB: loop body
LE: loop exit
PB: predicated region body
PF: predicated region fallthrough
CT: control target
= control target key end

     0   :  { %15 = vsyncpa [#allocation3], 0  ;;  %s4224_s0 = inlined_call_operand.vmem [shape: f32[56,128], index: 0, kind: input, shape index: {}]   ;;  %s4225_s1 = inlined_call_operand.hbm [shape: f32[56,8,128], index: 1, kind: input, shape index: {}]   ;;  %s4226_s2 = inlined_call_operand.vmem [shape: s32[56,8], index: 2, kind: input, shape index: {}]   ;;  %s4227_s3 = inlined_call_operand.hbm [shape: f32[128,128], index: 3, kind: input, shape index: {}]   ;;  %s4228_s4 = inlined_call_operand.hbm [shape: f32[128,128], index: 4, kind: input, shape index: {}]   ;;  %s4229_s5 = inlined_call_operand.hbm [shape: f32[128,128], index: 5, kind: input, shape index: {}]   ;;  %s4230_s6 = inlined_call_operand.hbm [shape: f32[56,128], index: 6, kind: output, shape index: {0}]   ;;  %s4231_s7 = inlined_call_operand.hbm [shape: f32[56,128], index: 7, kind: output, shape index: {1}]   ;;  %s4232_s8 = inlined_call_operand.vmem [shape: f32[56,8], index: 8, kind: output, shape index: {2}]   ;;  %s4233_s9 = inlined_call_operand.vmem [shape: f32[56,8], index: 9, kind: output, shape index: {3}]  }
   0x1   :  { %16 = vsyncpa [#allocation6], 0 }
   0x2   :  { %17 = vsyncpa [#allocation9], 0 }
   0x3   :  { %18 = vsyncpa [#allocation4], 0 }
   0x4   :  { %19 = vsyncpa [#allocation12], 0  ;;  %s3297_s30 = smov [#allocation5]   ;;  %s3298_s11 = smov [#allocation2]  }
   0x5   :  { %s41_s10 = sshll.u32 %s3297_s30, 4  ;;  %s27_s12 = sshll.u32 %s3298_s11, 4  ;;  %s42_s10 = int_to_ptr.vmem [resolvable:$true] %s41_s10  ;;  %s3359_s12 = int_to_ptr.vmem [resolvable:$true] %s27_s12 }
   0x6   :  { %s3155_s15 = scalar_lea.hbm %s4227_s3, 2048 }
   0x7   :  { %p3156_p0 = scmp.ne.s32.totalorder %s4227_s3, %s3155_s15  ;;  %p3159_p1 = scmp.lt.u32.totalorder %s3155_s15, %s4227_s3 }
   0x9   :  { %p3161_p2 = pnand %p3159_p1, %p3156_p0 }
   0xb   :  { %3164 = shalt.err (!%p3161_p2)
}
   0xc   :  { %s3165_s20 = scalar_lea.vmem %s42_s10, 2048  ;;  %p3170_p4 = scmp.lt.s32.totalorder %s42_s10, %s42_s10 }
   0xd   :  { %p3166_p3 = scmp.ne.s32.totalorder %s42_s10, %s3165_s20  ;;  %p3171_p5 = scmp.lt.s32.totalorder %s3165_s20, %s3165_s20 }
   0xf   :  { %p3172_p6 = por %p3171_p5, %p3170_p4 }
  0x11   :  { %p3173_p7 = pnand %p3172_p6, %p3166_p3 }
  0x13   :  { %3176 = shalt.err (!%p3173_p7)
}
  0x14   :  { %s3299_s21 = smov 128   ;;  %s3300_s22 = smov 8  }
  0x15   :  { %47 = dma.hbm_to_vmem [thread:$0]  %s4227_s3, 2048, %s42_s10, [#allocation6], %s3299_s21, %s3299_s21, %s3300_s22  }
  0x16   :  { %s3177_s27 = scalar_lea.hbm %s4225_s1, 7168 }
  0x17   :  { %p3178_p8 = scmp.ne.s32.totalorder %s4225_s1, %s3177_s27  ;;  %p3181_p9 = scmp.lt.u32.totalorder %s3177_s27, %s4225_s1 }
  0x19   :  { %p3183_p10 = pnand %p3181_p9, %p3178_p8 }
  0x1b   :  { %3186 = shalt.err (!%p3183_p10)
}
  0x1c   :  { %s3187_s13 = scalar_lea.vmem %s3359_s12, 7168  ;;  %p3192_p12 = scmp.lt.s32.totalorder %s3359_s12, %s3359_s12 }
  0x1d   :  { %p3188_p11 = scmp.ne.s32.totalorder %s3359_s12, %s3187_s13  ;;  %p3193_p13 = scmp.lt.s32.totalorder %s3187_s13, %s3187_s13 }
  0x1f   :  { %p3194_p0 = por %p3193_p13, %p3192_p12 }
  0x21   :  { %p3195_p1 = pnand %p3194_p0, %p3188_p11 }
  0x23   :  { %3198 = shalt.err (!%p3195_p1)
}
  0x24   :  { %33 = dma.hbm_to_vmem [thread:$0]  %s4225_s1, 7168, %s3359_s12, [#allocation3], %s3299_s21, %s3299_s21, %s3300_s22  }
  0x25   :  { %s3301_s14 = smov [#allocation7]   ;;  %s3302_s16 = smov [#allocation8]  }
  0x26   :  { %s53_s15 = sshll.u32 %s3301_s14, 4  ;;  %s65_s17 = sshll.u32 %s3302_s16, 4  ;;  %s54_s15 = int_to_ptr.vmem [resolvable:$true] %s53_s15  ;;  %s3396_s17 = int_to_ptr.vmem [resolvable:$true] %s65_s17 }
  0x27   :  { %s3199_s20 = scalar_lea.hbm %s4228_s4, 2048 }
  0x28   :  { %p3200_p2 = scmp.ne.s32.totalorder %s4228_s4, %s3199_s20  ;;  %p3203_p3 = scmp.lt.u32.totalorder %s3199_s20, %s4228_s4 }
  0x2a   :  { %p3205_p4 = pnand %p3203_p3, %p3200_p2 }
  0x2c   :  { %3208 = shalt.err (!%p3205_p4)
}
  0x2d   :  { %s3209_s1 = scalar_lea.vmem %s54_s15, 2048  ;;  %p3214_p6 = scmp.lt.s32.totalorder %s54_s15, %s54_s15 }
  0x2e   :  { %p3210_p5 = scmp.ne.s32.totalorder %s54_s15, %s3209_s1  ;;  %p3215_p7 = scmp.lt.s32.totalorder %s3209_s1, %s3209_s1 }
  0x30   :  { %p3216_p8 = por %p3215_p7, %p3214_p6 }
  0x32   :  { %p3217_p9 = pnand %p3216_p8, %p3210_p5 }
  0x34   :  { %3220 = shalt.err (!%p3217_p9)
}
  0x35   :  { %59 = dma.hbm_to_vmem [thread:$0]  %s4228_s4, 2048, %s54_s15, [#allocation6], %s3299_s21, %s3299_s21, %s3300_s22  }
  0x36   :  { %s3221_s30 = scalar_lea.hbm %s4229_s5, 2048 }
  0x37   :  { %p3222_p10 = scmp.ne.s32.totalorder %s4229_s5, %s3221_s30  ;;  %p3225_p11 = scmp.lt.u32.totalorder %s3221_s30, %s4229_s5 }
  0x39   :  { %p3227_p12 = pnand %p3225_p11, %p3222_p10 }
  0x3b   :  { %3230 = shalt.err (!%p3227_p12)
}
  0x3c   :  { %s3231_s14 = scalar_lea.vmem %s3396_s17, 2048  ;;  %p3236_p0 = scmp.lt.s32.totalorder %s3396_s17, %s3396_s17 }
  0x3d   :  { %p3232_p13 = scmp.ne.s32.totalorder %s3396_s17, %s3231_s14  ;;  %p3237_p1 = scmp.lt.s32.totalorder %s3231_s14, %s3231_s14 }
  0x3f   :  { %p3238_p2 = por %p3237_p1, %p3236_p0 }
  0x41   :  { %p3239_p3 = pnand %p3238_p2, %p3232_p13 }
  0x43   :  { %3242 = shalt.err (!%p3239_p3)
}
  0x44   :  { %71 = dma.hbm_to_vmem [thread:$0]  %s4229_s5, 2048, %s3396_s17, [#allocation9], %s3299_s21, %s3299_s21, %s3300_s22  }
  0x45   :  { %3287 = dma.done.wait [#allocation3], 7168  }
  0x46   :  { %3288 = vsyncadd [#allocation3], 4294960128 }
  0x47   :  { %3289 = dma.done.wait [#allocation6], 4096  }
  0x48   :  { %3290 = vsyncadd [#allocation6], 4294963200 }
  0x49   :  { %3291 = dma.done.wait [#allocation9], 2048  }
  0x4a   :  { %3292 = vsyncadd [#allocation9], 4294965248  ;;  %v3303_v0 = vmov 0.0|0.0   ;;  %vm3304_vm0 = vmmov 0   ;;  %v3305_v1 = vmov 0.0   ;;  %v147_v2 = vld [vmem:[#allocation5] sm:$0xff]  ;;  %v274_v35 = vlaneseq }
  0x4b   :  { %2939 = vmatprep.subr.bf16.mxu0 %v3303_v0  ;;  %2812 = vmatprep.mubr.msk.f32.mxu0 %vm3304_vm0, %v3305_v1  ;;  %v148_v3 = vld [vmem:[#allocation5 + $0x8] sm:$0xff]  ;;  %v149_v4 = vld [vmem:[#allocation5 + $0x10] sm:$0xff]  ;;  %v150_v6 = vld [vmem:[#allocation5 + $0x18] sm:$0xff]  ;;  %v3306_v33 = vmov 1966171168   ;;  %vm1357_vm1 = vcmask 1041409  }
  0x4c   :  { %2963 = vmatprep.subr.bf16.mxu1 %v3303_v0  ;;  %2865 = vmatprep.mubr.msk.f32.mxu1 %vm3304_vm0, %v3305_v1  ;;  %v2940_v5 = vpack.c.bf16 %v148_v3, %v147_v2  ;;  %v2943_v7 = vpack.c.bf16 %v150_v6, %v149_v4  ;;  %v151_v8 = vld [vmem:[#allocation5 + $0x20] sm:$0xff]  ;;  %v152_v9 = vld [vmem:[#allocation5 + $0x28] sm:$0xff]  ;;  %v153_v11 = vld [vmem:[#allocation5 + $0x30] sm:$0xff]  ;;  %v272_v34 = vunpack.c.l.s4 %v3306_v33  ;;  %v3483_v37 = vshrl.u32 %v274_v35, 7 }
  0x4d   :  { %v2946_v10 = vpack.c.bf16 %v152_v9, %v151_v8  ;;  %v154_v12 = vld [vmem:[#allocation5 + $0x38] sm:$0xff]  ;;  %v155_v14 = vld [vmem:[#allocation5 + $0x40] sm:$0xff]  ;;  %v156_v15 = vld [vmem:[#allocation5 + $0x48] sm:$0xff]  ;;  %vm1359_vm2 = vcmask 1042434   ;;  %vm1361_vm3 = vcmask 1043459   ;;  %vm1363_vm4 = vcmask 1044484  }
  0x4e   :  { %2941 = vmatpush3.bf16.msra.mxu0 %v2940_v5  ;;  %v2949_v13 = vpack.c.bf16 %v154_v12, %v153_v11  ;;  %v2952_v16 = vpack.c.bf16 %v156_v15, %v155_v14  ;;  %v157_v17 = vld [vmem:[#allocation5 + $0x50] sm:$0xff]  ;;  %v158_v18 = vld [vmem:[#allocation5 + $0x58] sm:$0xff]  ;;  %v159_v20 = vld [vmem:[#allocation5 + $0x60] sm:$0xff]  ;;  %v273_v36 = vunpack.c.0.s8 %v272_v34  ;;  %v3490_v43 = vsub.s32 0, %v3483_v37 }
  0x4f   :  { %2942 = vmatprep.subr.bf16.mxu0 %v3303_v0  ;;  %v2955_v19 = vpack.c.bf16 %v158_v18, %v157_v17  ;;  %v160_v21 = vld [vmem:[#allocation5 + $0x68] sm:$0xff]  ;;  %v161_v23 = vld [vmem:[#allocation5 + $0x70] sm:$0xff]  ;;  %v162_v24 = vld [vmem:[#allocation5 + $0x78] sm:$0xff]  ;;  %vm1365_vm5 = vcmask 1045509   ;;  %vm1367_vm6 = vcmask 1046534   ;;  %vm1369_vm7 = vcmask 1047559  }
  0x50   :  { %v2958_v22 = vpack.c.bf16 %v160_v21, %v159_v20  ;;  %v2961_v25 = vpack.c.bf16 %v162_v24, %v161_v23  ;;  %v84_v26 = vld [vmem:[%s4224_s0] sm:$0xff]  ;;  %v85_v27 = vld [vmem:[%s4224_s0 + $0x8] sm:$0xff]  ;;  %v86_v28 = vld [vmem:[%s4224_s0 + $0x10] sm:$0xff]  ;;  %v3486_v38 = vsub.s32 %v273_v36, %v3483_v37  ;;  %vm1427_vm9 = vcmask 64512  }
  0x51   :  { %v87_v29 = vld [vmem:[%s4224_s0 + $0x18] sm:$0xff]  ;;  %v88_v30 = vld [vmem:[%s4224_s0 + $0x20] sm:$0xff]  ;;  %v89_v31 = vld [vmem:[%s4224_s0 + $0x28] sm:$0xff] }
  0x52   :  { %2944 = vmatpush3.bf16.msra.mxu0 %v2943_v7  ;;  %v90_v32 = vld [vmem:[%s4224_s0 + $0x30] sm:$0xff]  ;;  %v91_v48 = vld [vmem:[#allocation2] sm:$0xff]  ;;  %v92_v59 = vld [vmem:[#allocation2 + $0x8] sm:$0xff] }
  0x53   :  { %2945 = vmatprep.subr.bf16.mxu0 %v3303_v0  ;;  %v96_v2 = vld [vmem:[#allocation2 + $0x28] sm:$0xff]  ;;  %v93_v9 = vld [vmem:[#allocation2 + $0x10] sm:$0xff]  ;;  %v95_v20 = vld [vmem:[#allocation2 + $0x20] sm:$0xff] }
  0x54   :  { %v100_v11 = vld [vmem:[#allocation2 + $0x48] sm:$0xff]  ;;  %v101_v24 = vld [vmem:[#allocation2 + $0x50] sm:$0xff]  ;;  %v94_v33 = vld [vmem:[#allocation2 + $0x18] sm:$0xff] }
  0x56   :  { %2947 = vmatpush3.bf16.msra.mxu0 %v2946_v10 }
  0x57   :  { %2948 = vmatprep.subr.bf16.mxu0 %v3303_v0 }
  0x5a   :  { %2950 = vmatpush3.bf16.msra.mxu0 %v2949_v13 }
  0x5b   :  { %2951 = vmatprep.subr.bf16.mxu0 %v3303_v0 }
  0x5e   :  { %2953 = vmatpush3.bf16.msra.mxu0 %v2952_v16 }
  0x5f   :  { %2954 = vmatprep.subr.bf16.mxu0 %v3303_v0 }
  0x62   :  { %2956 = vmatpush3.bf16.msra.mxu0 %v2955_v19 }
  0x63   :  { %2957 = vmatprep.subr.bf16.mxu0 %v3303_v0 }
  0x66   :  { %2959 = vmatpush3.bf16.msra.mxu0 %v2958_v22 }
  0x67   :  { %2960 = vmatprep.subr.bf16.mxu0 %v3303_v0 }
  0x6a   :  { %2962 = vmatpush3.bf16.msra.mxu0 %v2961_v25 }
  0x6b   :  { %2987 = vmatprep.subr.bf16.mxu0 %v3303_v0 }
  0x6d   :  { %2813 = vmatmul.mubr.f32.vlgmr.msra.gmra.mrb[0].mxu0 %v84_v26 }
  0x6e   :  { %2815 = vmatprep.mubr.msk.f32.mxu0 %vm3304_vm0, %v3305_v1 }
  0x71   :  { %2816 = vmatmul.mubr.f32.gmra.mrb[2].mxu0 %v85_v27 }
  0x72   :  { %2818 = vmatprep.mubr.msk.f32.mxu0 %vm3304_vm0, %v3305_v1 }
  0x75   :  { %2819 = vmatmul.mubr.f32.gmra.mrb[4].mxu0 %v86_v28 }
  0x76   :  { %2821 = vmatprep.mubr.msk.f32.mxu0 %vm3304_vm0, %v3305_v1 }
  0x79   :  { %2822 = vmatmul.mubr.f32.gmra.mrb[6].mxu0 %v87_v29 }
  0x7a   :  { %2824 = vmatprep.mubr.msk.f32.mxu0 %vm3304_vm0, %v3305_v1 }
  0x7d   :  { %2825 = vmatmul.mubr.f32.gmra.mrb[8].mxu0 %v88_v30 }
  0x7e   :  { %2827 = vmatprep.mubr.msk.f32.mxu0 %vm3304_vm0, %v3305_v1 }
  0x81   :  { %2828 = vmatmul.mubr.f32.gmra.mrb[10].mxu0 %v89_v31 }
  0x82   :  { %2830 = vmatprep.mubr.msk.f32.mxu0 %vm3304_vm0, %v3305_v1 }
  0x85   :  { %2831 = vmatmul.mubr.f32.gmra.mrb[12].mxu0 %v90_v32 }
  0x86   :  { %2918 = vmatprep.mubr.msk.f32.mxu0 %vm3304_vm0, %v3305_v1 }
 0x140   :  { %v229_v39 = vpop.f32.mrb[0].mxu0 }
 0x141   :  { %v270_v40 = vcombine.high %v229_v39, %v229_v39  ;;  %v277_v41 = vrot.slane %v229_v39, %v3486_v38  ;;  %v2814_v42 = vpop.f32.mrb[1].mxu0 }
 0x142   :  { %v98_v42 = vld [vmem:[#allocation2 + $0x38] sm:$0xff] }
 0x143   :  { %v284_v44 = vrot.slane %v270_v40, %v3486_v38  ;;  %v285_v45 = vcombine.high %v277_v41, %v277_v41  ;;  %v293_v46 = vrot.slane %v277_v41, %v3486_v38 }
 0x144   :  { %v234_v47 = vpop.f32.mrb[2].mxu0 }
 0x145   :  { %v286_v49 = vcombine.high %v284_v44, %v284_v44  ;;  %v319_v50 = vcombine.high %v234_v47, %v234_v47  ;;  %v326_v51 = vrot.slane %v234_v47, %v3486_v38  ;;  %v616_v52 = vrot.slane %v293_v46, %v3490_v43  ;;  %v2817_v53 = vpop.f32.mrb[3].mxu0 }
 0x146   :  { %v307_v54 = vrot.slane %v285_v45, %v3486_v38  ;;  %v315_v55 = vcombine.high %v293_v46, %v293_v46  ;;  %v300_v5 = vrot.slane %v284_v44, %v3486_v38  ;;  %v99_v44 = vld [vmem:[#allocation2 + $0x40] sm:$0xff] }
 0x147   :  { %v334_v56 = vcombine.high %v326_v51, %v326_v51  ;;  %v342_v57 = vrot.slane %v326_v51, %v3486_v38  ;;  %v893_v58 = vmul.f32 %v616_v52, %v91_v48  ;;  %v314_v61 = vrot.slane %v286_v49, %v3486_v38 }
 0x148   :  { %v620_v60 = vrot.slane %v307_v54, %v3490_v43  ;;  %v239_v62 = vpop.f32.mrb[4].mxu0  ;;  %v333_v63 = vrot.slane %v319_v50, %v3486_v38  ;;  %v624_v3 = vrot.slane %v315_v55, %v3490_v43  ;;  %v632_v17 = vrot.slane %v300_v5, %v3490_v43  ;;  %v104_v50 = vld [vmem:[#allocation2 + $0x68] sm:$0xff] }
 0x149   :  { %949 = vadd.xlane.f32.xlu1 %v893_v58  ;;  %v3503_v4 = vrot.slane %v334_v56, %v3486_v38  ;;  %v2820_v6 = vpop.f32.mrb[5].mxu0  ;;  %v636_v8 = vrot.slane %v314_v61, %v3490_v43  ;;  %v364_v10 = vcombine.high %v342_v57, %v342_v57  ;;  %v375_v22 = vrot.slane %v239_v62, %v3486_v38 }
 0x14a   :  { %v894_v7 = vmul.f32 %v620_v60, %v92_v59  ;;  %v335_v15 = vcombine.high %v333_v63, %v333_v63  ;;  %v895_v16 = vmul.f32 %v624_v3, %v93_v9  ;;  %v317_v23 = vcombine.high %v307_v54, %v307_v54 }
 0x14b   :  { %v652_v12 = vrot.slane %v3503_v4, %v3490_v43  ;;  %v898_v13 = vmul.f32 %v636_v8, %v96_v2  ;;  %v656_v21 = vrot.slane %v364_v10, %v3490_v43  ;;  %v318_v25 = vcombine.high %v314_v61, %v314_v61  ;;  %v97_v61 = vld [vmem:[#allocation2 + $0x30] sm:$0xff] }
 0x14c   :  { %951 = vadd.xlane.f32.xlu0 %v894_v7  ;;  %v3509_v14 = vpop.f32.mrb[6].mxu0  ;;  %v897_v27 = vmul.f32 %v632_v17, %v95_v20  ;;  %v383_v30 = vcombine.high %v375_v22, %v375_v22  ;;  %v628_v31 = vrot.slane %v317_v23, %v3490_v43  ;;  %v3516_v32 = vrot.slane %v335_v15, %v3486_v38  ;;  %v109_v15 = vld [vmem:[#allocation2 + $0x90] sm:$0xff] }
 0x14d   :  { %v2823_v18 = vpop.f32.mrb[7].mxu0  ;;  %959 = vadd.xlane.f32.xlu1 %v898_v13  ;;  %v902_v19 = vmul.f32 %v652_v12, %v100_v11  ;;  %v903_v29 = vmul.f32 %v656_v21, %v101_v24  ;;  %v3519_v34 = vrot.slane %v375_v22, %v3486_v38  ;;  %v644_v36 = vrot.slane %v318_v25, %v3490_v43  ;;  %v103_v13 = vld [vmem:[#allocation2 + $0x60] sm:$0xff] }
 0x14e   :  { %v648_v39 = vrot.slane %v342_v57, %v3490_v43  ;;  %v368_v41 = vcombine.high %v239_v62, %v239_v62  ;;  %v896_v46 = vmul.f32 %v628_v31, %v94_v33  ;;  %v668_v47 = vrot.slane %v3516_v32, %v3490_v43  ;;  %v108_v62 = vld [vmem:[#allocation2 + $0x88] sm:$0xff] }
 0x14f   :  { %v316_v48 = vcombine.high %v300_v5, %v300_v5  ;;  %v3528_v49 = vrot.slane %v383_v30, %v3486_v38  ;;  %v900_v51 = vmul.f32 %v644_v36, %v98_v42  ;;  %v3531_v53 = vrot.slane %v333_v63, %v3486_v38  ;;  %v106_v36 = vld [vmem:[#allocation2 + $0x78] sm:$0xff] }
 0x150   :  { %953 = vadd.xlane.f32.xlu0 %v895_v16  ;;  %v249_v26 = vpop.f32.mrb[8].mxu0  ;;  %v901_v52 = vmul.f32 %v648_v39, %v99_v44  ;;  %v413_v54 = vcombine.high %v3519_v34, %v3519_v34  ;;  %v3538_v57 = vrot.slane %v368_v41, %v3486_v38  ;;  %v906_v58 = vmul.f32 %v668_v47, %v104_v50 }
 0x151   :  { %v2826_v28 = vpop.f32.mrb[9].mxu0  ;;  %967 = vadd.xlane.f32.xlu1 %v902_v19  ;;  %v640_v59 = vrot.slane %v316_v48, %v3490_v43  ;;  %v684_v60 = vrot.slane %v3528_v49, %v3490_v43  ;;  %v466_v63 = vcombine.high %v249_v26, %v249_v26  ;;  %v473_v2 = vrot.slane %v249_v26, %v3486_v38  ;;  %v112_v48 = vld [vmem:[#allocation2 + $0xa8] sm:$0xff] }
 0x152   :  { %v664_v3 = vrot.slane %v3531_v53, %v3490_v43  ;;  %v688_v5 = vrot.slane %v413_v54, %v3490_v43  ;;  %v424_v6 = vrot.slane %v3509_v14, %v3486_v38  ;;  %v384_v10 = vcombine.high %v3538_v57, %v3538_v57  ;;  %v102_v28 = vld [vmem:[#allocation2 + $0x58] sm:$0xff] }
 0x153   :  { %v480_v7 = vrot.slane %v466_v63, %v3486_v38  ;;  %v481_v8 = vcombine.high %v473_v2, %v473_v2  ;;  %v3551_v9 = vrot.slane %v473_v2, %v3486_v38  ;;  %v899_v11 = vmul.f32 %v640_v59, %v97_v61 }
 0x154   :  { %957 = vadd.xlane.f32.xlu0 %v897_v27  ;;  %v3523_v40 = vpop.f32.mrb[10].mxu0  ;;  %v910_v12 = vmul.f32 %v684_v60, %v108_v62  ;;  %v366_v16 = vcombine.high %v3503_v4, %v3503_v4  ;;  %v367_v20 = vcombine.high %v3516_v32, %v3516_v32  ;;  %v905_v21 = vmul.f32 %v664_v3, %v103_v13  ;;  %v107_v32 = vld [vmem:[#allocation2 + $0x80] sm:$0xff]  ;;  %v105_v3 = vld [vmem:[#allocation2 + $0x70] sm:$0xff] }
 0x155   :  { %v2829_v45 = vpop.f32.mrb[11].mxu0  ;;  %969 = vadd.xlane.f32.xlu1 %v903_v29  ;;  %v482_v17 = vcombine.high %v480_v7, %v480_v7  ;;  %v3558_v18 = vrot.slane %v480_v7, %v3486_v38  ;;  %v3561_v19 = vrot.slane %v481_v8, %v3486_v38  ;;  %v911_v22 = vmul.f32 %v688_v5, %v109_v15  ;;  %v117_v5 = vld [vmem:[#allocation2 + $0xd0] sm:$0xff] }
 0x156   :  { %v417_v23 = vcombine.high %v3509_v14, %v3509_v14  ;;  %v3568_v24 = vrot.slane %v424_v6, %v3486_v38  ;;  %v660_v4 = vrot.slane %v366_v16, %v3490_v43  ;;  %v3572_v25 = vrot.slane %v384_v10, %v3486_v38  ;;  %v119_v16 = vld [vmem:[#allocation2 + $0xe0] sm:$0xff] }
 0x157   :  { %v3575_v26 = vrot.slane %v482_v17, %v3486_v38  ;;  %v515_v27 = vcombine.high %v3523_v40, %v3523_v40  ;;  %v680_v29 = vrot.slane %v3519_v34, %v3490_v43  ;;  %v522_v14 = vrot.slane %v3523_v40, %v3486_v38 }
 0x158   :  { %955 = vadd.xlane.f32.xlu0 %v896_v46  ;;  %v3535_v55 = vpop.f32.mrb[12].mxu0  ;;  %v432_v30 = vcombine.high %v424_v6, %v424_v6  ;;  %v676_v31 = vrot.slane %v367_v20, %v3490_v43  ;;  %v365_v39 = vcombine.high %v3531_v53, %v3531_v53  ;;  %v462_v41 = vcombine.high %v3568_v24, %v3568_v24 }
 0x159   :  { %v2832_v56 = vpop.f32.mrb[13].mxu0  ;;  %963 = vadd.xlane.f32.xlu1 %v900_v51  ;;  %v529_v33 = vrot.slane %v515_v27, %v3486_v38  ;;  %v530_v42 = vcombine.high %v522_v14, %v522_v14  ;;  %v3590_v34 = vrot.slane %v522_v14, %v3486_v38  ;;  %v431_v40 = vrot.slane %v417_v23, %v3486_v38  ;;  %v115_v23 = vld [vmem:[#allocation2 + $0xc0] sm:$0xff]  ;;  %v118_v14 = vld [vmem:[#allocation2 + $0xd8] sm:$0xff] }
 0x15a   :  { %v904_v44 = vmul.f32 %v660_v4, %v102_v28  ;;  %v700_v45 = vrot.slane %v3572_v25, %v3490_v43  ;;  %v909_v47 = vmul.f32 %v680_v29, %v107_v32  ;;  %v908_v51 = vmul.f32 %v676_v31, %v106_v36  ;;  %v110_v36 = vld [vmem:[#allocation2 + $0x98] sm:$0xff] }
 0x15b   :  { %v3596_v46 = vrot.slane %v529_v33, %v3486_v38  ;;  %v3599_v50 = vrot.slane %v530_v42, %v3486_v38  ;;  %v564_v53 = vcombine.high %v3535_v55, %v3535_v55  ;;  %v571_v54 = vrot.slane %v3535_v55, %v3486_v38  ;;  %v120_v42 = vld [vmem:[#allocation2 + $0xe8] sm:$0xff] }
 0x15c   :  { %965 = vadd.xlane.f32.xlu0 %v901_v52  ;;  %v531_v52 = vcombine.high %v529_v33, %v529_v33  ;;  %v3606_v56 = vrot.slane %v432_v30, %v3486_v38  ;;  %v720_v59 = vrot.slane %v462_v41, %v3490_v43  ;;  %v398_v60 = vrot.slane %v3538_v57, %v3486_v38 }
 0x15d   :  { %975 = vadd.xlane.f32.xlu1 %v906_v58  ;;  %v672_v58 = vrot.slane %v365_v39, %v3490_v43  ;;  %v914_v61 = vmul.f32 %v700_v45, %v112_v48  ;;  %v447_v62 = vrot.slane %v431_v40, %v3486_v38  ;;  %v578_v63 = vrot.slane %v564_v53, %v3486_v38 }
 0x15e   :  { %v579_v2 = vcombine.high %v571_v54, %v571_v54  ;;  %v3615_v55 = vrot.slane %v571_v54, %v3486_v38  ;;  %v3618_v6 = vrot.slane %v531_v52, %v3486_v38  ;;  %v696_v7 = vrot.slane %v398_v60, %v3490_v43 }
 0x15f   :  { %v464_v57 = vcombine.high %v3606_v56, %v3606_v56  ;;  %v907_v10 = vmul.f32 %v672_v58, %v105_v3  ;;  %v728_v13 = vrot.slane %v447_v62, %v3490_v43  ;;  %v580_v15 = vcombine.high %v578_v63, %v578_v63  ;;  %v116_v58 = vld [vmem:[#allocation2 + $0xc8] sm:$0xff]  ;;  %v126_v3 = vld [vmem:[#allocation2 + $0x118] sm:$0xff] }
 0x160   :  { %961 = vadd.xlane.f32.xlu0 %v899_v11  ;;  %v3624_v8 = vrot.slane %v579_v2, %v3486_v38  ;;  %v919_v11 = vmul.f32 %v720_v59, %v117_v5  ;;  %v433_v17 = vcombine.high %v431_v40, %v431_v40  ;;  %v712_v20 = vrot.slane %v3568_v24, %v3490_v43  ;;  %v124_v59 = vld [vmem:[#allocation2 + $0x108] sm:$0xff]  ;;  %v114_v2 = vld [vmem:[#allocation2 + $0xb8] sm:$0xff]  ;;  %v123_v5 = vld [vmem:[#allocation2 + $0x100] sm:$0xff] }
 0x161   :  { %983 = vadd.xlane.f32.xlu1 %v910_v12  ;;  %v111_v12 = vld [vmem:[#allocation2 + $0xa0] sm:$0xff]  ;;  %v921_v4 = vmul.f32 %v728_v13, %v119_v16  ;;  %v724_v27 = vrot.slane %v464_v57, %v3490_v43  ;;  %v415_v28 = vcombine.high %v3528_v49, %v3528_v49  ;;  %v3636_v29 = vrot.slane %v580_v15, %v3486_v38 }
 0x162   :  { %v917_v30 = vmul.f32 %v712_v20, %v115_v23  ;;  %v461_v24 = vrot.slane %v433_v17, %v3486_v38  ;;  %v414_v33 = vcombine.high %v398_v60, %v398_v60  ;;  %v463_v41 = vcombine.high %v447_v62, %v447_v62  ;;  %v125_v20 = vld [vmem:[#allocation2 + $0x110] sm:$0xff] }
 0x163   :  { %v920_v31 = vmul.f32 %v724_v27, %v118_v14  ;;  %v692_v32 = vrot.slane %v415_v28, %v3490_v43  ;;  %v716_v48 = vrot.slane %v3606_v56, %v3490_v43  ;;  %v748_v52 = vrot.slane %v3561_v19, %v3490_v43  ;;  %v129_v23 = vld [vmem:[#allocation2 + $0x130] sm:$0xff]  ;;  %v122_v14 = vld [vmem:[#allocation2 + $0xf8] sm:$0xff] }
 0x164   :  { %973 = vadd.xlane.f32.xlu0 %v905_v21  ;;  %v3630_v21 = vrot.slane %v578_v63, %v3486_v38  ;;  %v732_v39 = vrot.slane %v461_v24, %v3490_v43  ;;  %v704_v40 = vrot.slane %v414_v33, %v3490_v43  ;;  %v736_v38 = vrot.slane %v463_v41, %v3490_v43  ;;  %v134_v41 = vld [vmem:[#allocation2 + $0x158] sm:$0xff] }
 0x165   :  { %985 = vadd.xlane.f32.xlu1 %v911_v22  ;;  %v913_v22 = vmul.f32 %v696_v7, %v111_v12  ;;  %v912_v49 = vmul.f32 %v692_v32, %v110_v36  ;;  %v416_v53 = vcombine.high %v3572_v25, %v3572_v25  ;;  %v513_v54 = vcombine.high %v3561_v19, %v3561_v19 }
 0x166   :  { %v922_v45 = vmul.f32 %v732_v39, %v120_v42  ;;  %v926_v62 = vmul.f32 %v748_v52, %v124_v59  ;;  %v744_v25 = vrot.slane %v3551_v9, %v3490_v43  ;;  %v764_v57 = vrot.slane %v3575_v26, %v3490_v43  ;;  %v127_v39 = vld [vmem:[#allocation2 + $0x120] sm:$0xff] }
 0x167   :  { %v708_v56 = vrot.slane %v416_v53, %v3490_v43  ;;  %v756_v63 = vrot.slane %v513_v54, %v3490_v43  ;;  %v512_v13 = vcombine.high %v3558_v18, %v3558_v18  ;;  %v465_v17 = vcombine.high %v461_v24, %v461_v24  ;;  %v137_v54 = vld [vmem:[#allocation2 + $0x170] sm:$0xff] }
 0x168   :  { %971 = vadd.xlane.f32.xlu0 %v904_v44  ;;  %v113_v44 = vld [vmem:[#allocation2 + $0xb0] sm:$0xff]  ;;  %v925_v12 = vmul.f32 %v744_v25, %v123_v5  ;;  %v780_v27 = vrot.slane %v3599_v50, %v3490_v43  ;;  %v562_v28 = vcombine.high %v3599_v50, %v3599_v50  ;;  %v760_v32 = vrot.slane %v3558_v18, %v3490_v43  ;;  %v135_v5 = vld [vmem:[#allocation2 + $0x160] sm:$0xff] }
 0x169   :  { %979 = vadd.xlane.f32.xlu1 %v908_v51  ;;  %v915_v51 = vmul.f32 %v704_v40, %v113_v44  ;;  %v916_v19 = vmul.f32 %v708_v56, %v114_v2  ;;  %v928_v7 = vmul.f32 %v756_v63, %v126_v3  ;;  %v776_v42 = vrot.slane %v3590_v34, %v3490_v43  ;;  %v140_v56 = vld [vmem:[#allocation2 + $0x188] sm:$0xff] }
 0x16a   :  { %v788_v36 = vrot.slane %v562_v28, %v3490_v43  ;;  %v560_v50 = vcombine.high %v3590_v34, %v3590_v34  ;;  %v929_v40 = vmul.f32 %v760_v32, %v127_v39  ;;  %v561_v18 = vcombine.high %v3596_v46, %v3596_v46 }
 0x16b   :  { %v514_v34 = vcombine.high %v3575_v26, %v3575_v26  ;;  %v792_v63 = vrot.slane %v3596_v46, %v3490_v43  ;;  %v824_v3 = vrot.slane %v3630_v21, %v3490_v43  ;;  %v611_v25 = vcombine.high %v3624_v8, %v3624_v8 }
 0x16c   :  { %981 = vadd.xlane.f32.xlu0 %v909_v47  ;;  %v121_v47 = vld [vmem:[#allocation2 + $0xf0] sm:$0xff]  ;;  %v936_v44 = vmul.f32 %v788_v36, %v134_v41  ;;  %v800_v53 = vrot.slane %v561_v18, %v3490_v43  ;;  %v1132_v41 = vand.u32 127, %v274_v35 }
 0x16d   :  { %991 = vadd.xlane.f32.xlu1 %v914_v61  ;;  %v923_v60 = vmul.f32 %v736_v38, %v121_v47  ;;  %v918_v61 = vmul.f32 %v716_v48, %v116_v58  ;;  %v136_v38 = vld [vmem:[#allocation2 + $0x168] sm:$0xff]  ;;  %v784_v48 = vrot.slane %v560_v50, %v3490_v43  ;;  %v772_v59 = vrot.slane %v514_v34, %v3490_v43 }
 0x16e   :  { %v937_v46 = vmul.f32 %v792_v63, %v135_v5 }
 0x170   :  { %977 = vadd.xlane.f32.xlu0 %v907_v10  ;;  %v511_v10 = vcombine.high %v3551_v9, %v3551_v9  ;;  %v740_v9 = vrot.slane %v465_v17, %v3490_v43 }
 0x171   :  { %1001 = vadd.xlane.f32.xlu1 %v919_v11  ;;  %v128_v11 = vld [vmem:[#allocation2 + $0x128] sm:$0xff] }
 0x172   :  { %v930_v15 = vmul.f32 %v764_v57, %v128_v11  ;;  %v752_v16 = vrot.slane %v511_v10, %v3490_v43  ;;  %v924_v24 = vmul.f32 %v740_v9, %v122_v14  ;;  %v609_v57 = vcombine.high %v3615_v55, %v3615_v55  ;;  %v139_v10 = vld [vmem:[#allocation2 + $0x180] sm:$0xff] }
 0x173   :  { %v610_v9 = vcombine.high %v3630_v21, %v3630_v21 }
 0x174   :  { %989 = vadd.xlane.f32.xlu0 %v913_v22  ;;  %v768_v22 = vrot.slane %v512_v13, %v3490_v43  ;;  %v142_v13 = vld [vmem:[#allocation2 + $0x198] sm:$0xff] }
 0x175   :  { %1005 = vadd.xlane.f32.xlu1 %v921_v4  ;;  %v927_v4 = vmul.f32 %v752_v16, %v125_v20  ;;  %v141_v16 = vld [vmem:[#allocation2 + $0x190] sm:$0xff]  ;;  %v563_v20 = vcombine.high %v3618_v6, %v3618_v6 }
 0x178   :  { %997 = vadd.xlane.f32.xlu0 %v917_v30  ;;  %v132_v30 = vld [vmem:[#allocation2 + $0x148] sm:$0xff] }
 0x179   :  { %1003 = vadd.xlane.f32.xlu1 %v920_v31  ;;  %v931_v31 = vmul.f32 %v768_v22, %v129_v23  ;;  %v934_v33 = vmul.f32 %v780_v27, %v132_v30  ;;  %v612_v22 = vcombine.high %v3636_v29, %v3636_v29  ;;  %v144_v23 = vld [vmem:[#allocation2 + $0x1a8] sm:$0xff]  ;;  %v804_v27 = vrot.slane %v563_v20, %v3490_v43  ;;  %v138_v30 = vld [vmem:[#allocation2 + $0x178] sm:$0xff] }
 0x17b   :  { %v836_v14 = vrot.slane %v612_v22, %v3490_v43  ;;  %v940_v32 = vmul.f32 %v804_v27, %v138_v30 }
 0x17c   :  { %987 = vadd.xlane.f32.xlu0 %v912_v49  ;;  %v131_v49 = vld [vmem:[#allocation2 + $0x140] sm:$0xff] }
 0x17d   :  { %1007 = vadd.xlane.f32.xlu1 %v922_v45  ;;  %v796_v45 = vrot.slane %v3618_v6, %v3490_v43  ;;  %v933_v47 = vmul.f32 %v776_v42, %v131_v49  ;;  %v146_v6 = vld [vmem:[#allocation2 + $0x1b8] sm:$0xff]  ;;  %v3711_v49 = vsub.s32 %v1132_v41, %v3483_v37 }
 0x17f   :  { %v938_v52 = vmul.f32 %v796_v45, %v136_v38 }
 0x180   :  { %993 = vadd.xlane.f32.xlu0 %v915_v51  ;;  %v133_v51 = vld [vmem:[#allocation2 + $0x150] sm:$0xff] }
 0x181   :  { %1009 = vadd.xlane.f32.xlu1 %v923_v60  ;;  %v935_v58 = vmul.f32 %v784_v48, %v133_v51  ;;  %v939_v60 = vmul.f32 %v800_v53, %v137_v54 }
 0x184   :  { %999 = vadd.xlane.f32.xlu0 %v918_v61  ;;  %v812_v61 = vrot.slane %v3624_v8, %v3490_v43  ;;  %v816_v8 = vrot.slane %v609_v57, %v3490_v43 }
 0x185   :  { %1015 = vadd.xlane.f32.xlu1 %v926_v62  ;;  %v130_v62 = vld [vmem:[#allocation2 + $0x138] sm:$0xff] }
 0x186   :  { %v932_v2 = vmul.f32 %v772_v59, %v130_v62  ;;  %v942_v26 = vmul.f32 %v812_v61, %v140_v56 }
 0x188   :  { %995 = vadd.xlane.f32.xlu0 %v916_v19  ;;  %v143_v19 = vld [vmem:[#allocation2 + $0x1a0] sm:$0xff] }
 0x189   :  { %1019 = vadd.xlane.f32.xlu1 %v928_v7  ;;  %v808_v7 = vrot.slane %v3615_v55, %v3490_v43  ;;  %v945_v11 = vmul.f32 %v824_v3, %v143_v19  ;;  %v828_v55 = vrot.slane %v3636_v29, %v3490_v43  ;;  %v948_v29 = vmul.f32 %v836_v14, %v146_v6 }
 0x18b   :  { %v946_v28 = vmul.f32 %v828_v55, %v144_v23 }
 0x18c   :  { %1013 = vadd.xlane.f32.xlu0 %v925_v12  ;;  %v820_v12 = vrot.slane %v611_v25, %v3490_v43 }
 0x18d   :  { %1023 = vadd.xlane.f32.xlu1 %v930_v15  ;;  %v941_v15 = vmul.f32 %v808_v7, %v139_v10 }
 0x18e   :  { %v944_v17 = vmul.f32 %v820_v12, %v142_v13 }
 0x190   :  { %1017 = vadd.xlane.f32.xlu0 %v927_v4  ;;  %v943_v4 = vmul.f32 %v816_v8, %v141_v16 }
 0x191   :  { %1025 = vadd.xlane.f32.xlu1 %v931_v31  ;;  %v832_v31 = vrot.slane %v610_v9, %v3490_v43 }
 0x194   :  { %1011 = vadd.xlane.f32.xlu0 %v924_v24  ;;  %v145_v24 = vld [vmem:[#allocation2 + $0x1b0] sm:$0xff] }
 0x195   :  { %1031 = vadd.xlane.f32.xlu1 %v934_v33  ;;  %v947_v33 = vmul.f32 %v832_v31, %v145_v24 }
 0x198   :  { %1021 = vadd.xlane.f32.xlu0 %v929_v40 }
 0x199   :  { %1035 = vadd.xlane.f32.xlu1 %v936_v44 }
 0x19c   :  { %1029 = vadd.xlane.f32.xlu0 %v933_v47 }
 0x19d   :  { %1039 = vadd.xlane.f32.xlu1 %v938_v52 }
 0x1a0   :  { %1033 = vadd.xlane.f32.xlu0 %v935_v58 }
 0x1a1   :  { %1041 = vadd.xlane.f32.xlu1 %v939_v60  ;;  %v1061_v60 = vld [vmem:[%s4226_s2] sm:$0xff] }
 0x1a2   :  { %vm1068_vm8 = vcmp.ne.s32.totalorder %v1061_v60, 0 }
 0x1a4   :  { %1027 = vadd.xlane.f32.xlu0 %v932_v2 }
 0x1a5   :  { %1047 = vadd.xlane.f32.xlu1 %v942_v26 }
 0x1a8   :  { %1037 = vadd.xlane.f32.xlu0 %v937_v46 }
 0x1a9   :  { %1053 = vadd.xlane.f32.xlu1 %v945_v11 }
 0x1ac   :  { %1045 = vadd.xlane.f32.xlu0 %v941_v15 }
 0x1ad   :  { %1051 = vadd.xlane.f32.xlu1 %v944_v17 }
 0x1b0   :  { %1049 = vadd.xlane.f32.xlu0 %v943_v4  ;;  %v1062_v4 = vld [vmem:[%s4226_s2 + $0x8] sm:$0xff] }
 0x1b1   :  { %1055 = vadd.xlane.f32.xlu1 %v946_v28  ;;  %vm1069_vm10 = vcmp.ne.s32.totalorder %v1062_v4, 0 }
 0x1b4   :  { %1043 = vadd.xlane.f32.xlu0 %v940_v32 }
 0x1b5   :  { %1059 = vadd.xlane.f32.xlu1 %v948_v29 }
 0x1b8   :  { %1057 = vadd.xlane.f32.xlu0 %v947_v33 }
 0x1d6   :  { %v950_v21 = vpop.xlane.xlu1 %949 }
 0x1d7   :  { %v1136_v38 = vrot.slane %v950_v21, %v3711_v49 }
 0x1d9   :  { %v952_v36 = vpop.xlane.xlu0 %951 }
 0x1da   :  { %v960_v39 = vpop.xlane.xlu1 %959  ;;  %v1140_v44 = vrot.slane %v952_v36, %v3711_v49 }
 0x1db   :  { %v1156_v61 = vrot.slane %v960_v39, %v3711_v49 }
 0x1dc   :  { %v1358_v35 = vsel %vm1357_vm1, %v1140_v44, %v1136_v38 }
 0x1dd   :  { %v954_v42 = vpop.xlane.xlu0 %953 }
 0x1de   :  { %v968_v50 = vpop.xlane.xlu1 %967  ;;  %v1144_v18 = vrot.slane %v954_v42, %v3711_v49 }
 0x1df   :  { %v1172_v25 = vrot.slane %v968_v50, %v3711_v49 }
 0x1e0   :  { %v1360_v52 = vsel %vm1359_vm2, %v1144_v18, %v1358_v35 }
 0x1e1   :  { %v958_v40 = vpop.xlane.xlu0 %957 }
 0x1e2   :  { %v970_v45 = vpop.xlane.xlu1 %969  ;;  %v1152_v54 = vrot.slane %v958_v40, %v3711_v49 }
 0x1e3   :  { %v1176_v11 = vrot.slane %v970_v45, %v3711_v49 }
 0x1e5   :  { %v956_v47 = vpop.xlane.xlu0 %955 }
 0x1e6   :  { %v1148_v48 = vrot.slane %v956_v47, %v3711_v49  ;;  %v964_v51 = vpop.xlane.xlu1 %963 }
 0x1e7   :  { %v1164_v63 = vrot.slane %v964_v51, %v3711_v49 }
 0x1e8   :  { %v1362_v34 = vsel %vm1361_vm3, %v1148_v48, %v1360_v52 }
 0x1e9   :  { %v966_v53 = vpop.xlane.xlu0 %965  ;;  %v1364_v59 = vsel %vm1363_vm4, %v1152_v54, %v1362_v34 }
 0x1ea   :  { %v976_v58 = vpop.xlane.xlu1 %975  ;;  %v1366_v26 = vsel %vm1365_vm5, %v1156_v61, %v1364_v59  ;;  %v1168_v5 = vrot.slane %v966_v53, %v3711_v49  ;;  %v1063_v61 = vld [vmem:[%s4226_s2 + $0x10] sm:$0xff] }
 0x1eb   :  { %v1188_v9 = vrot.slane %v976_v58, %v3711_v49  ;;  %vm1070_vm11 = vcmp.ne.s32.totalorder %v1063_v61, 0 }
 0x1ec   :  { %v1371_v12 = vsel %vm1357_vm1, %v1172_v25, %v1168_v5 }
 0x1ed   :  { %v962_v62 = vpop.xlane.xlu0 %961  ;;  %v1372_v16 = vsel %vm1359_vm2, %v1176_v11, %v1371_v12 }
 0x1ee   :  { %v1160_v56 = vrot.slane %v962_v62, %v3711_v49  ;;  %v984_v2 = vpop.xlane.xlu1 %983 }
 0x1ef   :  { %v1204_v39 = vrot.slane %v984_v2, %v3711_v49 }
 0x1f0   :  { %v1368_v3 = vsel %vm1367_vm6, %v1160_v56, %v1366_v26 }
 0x1f1   :  { %v974_v19 = vpop.xlane.xlu0 %973  ;;  %v1370_v7 = vsel %vm1369_vm7, %v1164_v63, %v1368_v3 }
 0x1f2   :  { %v3733_v57 = vsel %vm1068_vm8, -inf, %v1370_v7  ;;  %v986_v10 = vpop.xlane.xlu1 %985  ;;  %v1184_v55 = vrot.slane %v974_v19, %v3711_v49 }
 0x1f3   :  { %1428 = vst.msk [vmem:[%s4233_s9] sm:$0xff] %vm1427_vm9, %v3733_v57  ;;  %v1435_v46 = vsel %vm1427_vm9, %v3733_v57, -inf  ;;  %v1208_v50 = vrot.slane %v986_v10, %v3711_v49 }
 0x1f4   :  { %1436 = vmax.xlane.f32.xlu1 %v1435_v46 }
 0x1f5   :  { %v972_v13 = vpop.xlane.xlu0 %971 }
 0x1f6   :  { %v1180_v15 = vrot.slane %v972_v13, %v3711_v49  ;;  %v980_v8 = vpop.xlane.xlu1 %979 }
 0x1f7   :  { %v1196_v14 = vrot.slane %v980_v8, %v3711_v49 }
 0x1f8   :  { %v1373_v17 = vsel %vm1361_vm3, %v1180_v15, %v1372_v16 }
 0x1f9   :  { %v982_v20 = vpop.xlane.xlu0 %981  ;;  %v1374_v23 = vsel %vm1363_vm4, %v1184_v55, %v1373_v17  ;;  %v1064_v55 = vld [vmem:[%s4226_s2 + $0x18] sm:$0xff] }
 0x1fa   :  { %v992_v22 = vpop.xlane.xlu1 %991  ;;  %v1375_v6 = vsel %vm1365_vm5, %v1188_v9, %v1374_v23  ;;  %v1200_v41 = vrot.slane %v982_v20, %v3711_v49  ;;  %vm1071_vm12 = vcmp.ne.s32.totalorder %v1064_v55, 0 }
 0x1fb   :  { %v1220_v53 = vrot.slane %v992_v22, %v3711_v49 }
 0x1fc   :  { %v1378_v44 = vsel %vm1357_vm1, %v1204_v39, %v1200_v41 }
 0x1fd   :  { %v978_v27 = vpop.xlane.xlu0 %977  ;;  %v1379_v38 = vsel %vm1359_vm2, %v1208_v50, %v1378_v44 }
 0x1fe   :  { %v1192_v28 = vrot.slane %v978_v27, %v3711_v49  ;;  %v1002_v30 = vpop.xlane.xlu1 %1001 }
 0x1ff   :  { %v1240_v63 = vrot.slane %v1002_v30, %v3711_v49 }
 0x200   :  { %v1376_v31 = vsel %vm1367_vm6, %v1192_v28, %v1375_v6 }
 0x201   :  { %v990_v24 = vpop.xlane.xlu0 %989  ;;  %v1377_v32 = vsel %vm1369_vm7, %v1196_v14, %v1376_v31 }
 0x202   :  { %v3758_v29 = vsel %vm1069_vm10, -inf, %v1377_v32  ;;  %v1006_v33 = vpop.xlane.xlu1 %1005  ;;  %v1216_v35 = vrot.slane %v990_v24, %v3711_v49 }
 0x203   :  { %1429 = vst.msk [vmem:[%s4233_s9 + $0x8] sm:$0xff] %vm1427_vm9, %v3758_v29  ;;  %v1438_v21 = vsel %vm1427_vm9, %v3758_v29, -inf  ;;  %v1248_v13 = vrot.slane %v1006_v33, %v3711_v49 }
 0x204   :  { %1439 = vmax.xlane.f32.xlu1 %v1438_v21 }
 0x205   :  { %v998_v36 = vpop.xlane.xlu0 %997 }
 0x206   :  { %v1004_v42 = vpop.xlane.xlu1 %1003  ;;  %v1232_v54 = vrot.slane %v998_v36, %v3711_v49 }
 0x207   :  { %v1244_v19 = vrot.slane %v1004_v42, %v3711_v49 }
 0x209   :  { %v988_v40 = vpop.xlane.xlu0 %987 }
 0x20a   :  { %v1212_v45 = vrot.slane %v988_v40, %v3711_v49  ;;  %v1008_v18 = vpop.xlane.xlu1 %1007 }
 0x20b   :  { %v1252_v17 = vrot.slane %v1008_v18, %v3711_v49 }
 0x20c   :  { %v1380_v48 = vsel %vm1361_vm3, %v1212_v45, %v1379_v38 }
 0x20d   :  { %v994_v47 = vpop.xlane.xlu0 %993  ;;  %v1381_v52 = vsel %vm1363_vm4, %v1216_v35, %v1380_v48  ;;  %v1065_v48 = vld [vmem:[%s4226_s2 + $0x20] sm:$0xff] }
 0x20e   :  { %v1010_v51 = vpop.xlane.xlu1 %1009  ;;  %v1224_v59 = vrot.slane %v994_v47, %v3711_v49  ;;  %v1382_v62 = vsel %vm1365_vm5, %v1220_v53, %v1381_v52  ;;  %vm1072_vm13 = vcmp.ne.s32.totalorder %v1065_v48, 0 }
 0x20f   :  { %v1256_v23 = vrot.slane %v1010_v51, %v3711_v49 }
 0x210   :  { %v1383_v3 = vsel %vm1367_vm6, %v1224_v59, %v1382_v62 }
 0x211   :  { %v1000_v34 = vpop.xlane.xlu0 %999 }
 0x212   :  { %v1236_v58 = vrot.slane %v1000_v34, %v3711_v49  ;;  %v1016_v60 = vpop.xlane.xlu1 %1015 }
 0x213   :  { %v1268_v14 = vrot.slane %v1016_v60, %v3711_v49 }
 0x214   :  { %v1385_v56 = vsel %vm1357_vm1, %v1236_v58, %v1232_v54 }
 0x215   :  { %v996_v2 = vpop.xlane.xlu0 %995  ;;  %v1386_v25 = vsel %vm1359_vm2, %v1240_v63, %v1385_v56 }
 0x216   :  { %v1228_v26 = vrot.slane %v996_v2, %v3711_v49  ;;  %v1020_v5 = vpop.xlane.xlu1 %1019  ;;  %v1387_v11 = vsel %vm1361_vm3, %v1244_v19, %v1386_v25 }
 0x217   :  { %v1388_v16 = vsel %vm1363_vm4, %v1248_v13, %v1387_v11  ;;  %v1276_v36 = vrot.slane %v1020_v5, %v3711_v49 }
 0x218   :  { %v1384_v7 = vsel %vm1369_vm7, %v1228_v26, %v1383_v3  ;;  %v1389_v22 = vsel %vm1365_vm5, %v1252_v17, %v1388_v16 }
 0x219   :  { %v1014_v10 = vpop.xlane.xlu0 %1013  ;;  %v3791_v46 = vsel %vm1070_vm11, -inf, %v1384_v7  ;;  %v1390_v28 = vsel %vm1367_vm6, %v1256_v23, %v1389_v22  ;;  %v1066_v23 = vld [vmem:[%s4226_s2 + $0x28] sm:$0xff] }
 0x21a   :  { %1430 = vst.msk [vmem:[%s4233_s9 + $0x10] sm:$0xff] %vm1427_vm9, %v3791_v46  ;;  %v1441_v12 = vsel %vm1427_vm9, %v3791_v46, -inf  ;;  %v1024_v15 = vpop.xlane.xlu1 %1023  ;;  %v1264_v30 = vrot.slane %v1014_v10, %v3711_v49  ;;  %vm1073_vm14 = vcmp.ne.s32.totalorder %v1066_v23, 0  ;;  %v2439_v23 = vld [vmem:[#allocation8 + $0x8] sm:$0xff] }
 0x21b   :  { %1442 = vmax.xlane.f32.xlu1 %v1441_v12  ;;  %v1284_v38 = vrot.slane %v1024_v15, %v3711_v49 }
 0x21c   :  { %v1392_v39 = vsel %vm1357_vm1, %v1268_v14, %v1264_v30 }
 0x21d   :  { %v1018_v8 = vpop.xlane.xlu0 %1017 }
 0x21e   :  { %v1026_v20 = vpop.xlane.xlu1 %1025  ;;  %v1272_v31 = vrot.slane %v1018_v8, %v3711_v49 }
 0x21f   :  { %v1288_v34 = vrot.slane %v1026_v20, %v3711_v49 }
 0x220   :  { %v1393_v41 = vsel %vm1359_vm2, %v1272_v31, %v1392_v39 }
 0x221   :  { %v1012_v4 = vpop.xlane.xlu0 %1011  ;;  %v1394_v44 = vsel %vm1361_vm3, %v1276_v36, %v1393_v41  ;;  %v1067_v36 = vld [vmem:[%s4226_s2 + $0x30] sm:$0xff] }
 0x222   :  { %v1260_v9 = vrot.slane %v1012_v4, %v3711_v49  ;;  %v1032_v27 = vpop.xlane.xlu1 %1031  ;;  %vm1074_vm15 = vcmp.ne.s32.totalorder %v1067_v36, 0  ;;  %v2425_v36 = vld [vmem:[#allocation7 + $0x18] sm:$0xff] }
 0x223   :  { %v1300_v51 = vrot.slane %v1032_v27, %v3711_v49 }
 0x224   :  { %v1391_v6 = vsel %vm1369_vm7, %v1260_v9, %v1390_v28 }
 0x225   :  { %v1022_v24 = vpop.xlane.xlu0 %1021  ;;  %v3815_v32 = vsel %vm1071_vm12, -inf, %v1391_v6 }
 0x226   :  { %1431 = vst.msk [vmem:[%s4233_s9 + $0x18] sm:$0xff] %vm1427_vm9, %v3815_v32  ;;  %v1444_v33 = vsel %vm1427_vm9, %v3815_v32, -inf  ;;  %v1036_v21 = vpop.xlane.xlu1 %1035  ;;  %v1280_v42 = vrot.slane %v1022_v24, %v3711_v49 }
 0x227   :  { %1445 = vmax.xlane.f32.xlu0 %v1444_v33  ;;  %v1308_v2 = vrot.slane %v1036_v21, %v3711_v49 }
 0x228   :  { %v1395_v45 = vsel %vm1363_vm4, %v1280_v42, %v1394_v44 }
 0x229   :  { %v1030_v50 = vpop.xlane.xlu0 %1029  ;;  %v1396_v35 = vsel %vm1365_vm5, %v1284_v38, %v1395_v45 }
 0x22a   :  { %v1040_v40 = vpop.xlane.xlu1 %1039  ;;  %v1296_v52 = vrot.slane %v1030_v50, %v3711_v49  ;;  %v1397_v60 = vsel %vm1367_vm6, %v1288_v34, %v1396_v35 }
 0x22b   :  { %v1316_v13 = vrot.slane %v1040_v40, %v3711_v49 }
 0x22c   :  { %v1399_v61 = vsel %vm1357_vm1, %v1300_v51, %v1296_v52 }
 0x22d   :  { %v1034_v18 = vpop.xlane.xlu0 %1033 }
 0x22e   :  { %v1042_v47 = vpop.xlane.xlu1 %1041  ;;  %v1304_v58 = vrot.slane %v1034_v18, %v3711_v49 }
 0x22f   :  { %v1320_v27 = vrot.slane %v1042_v47, %v3711_v49 }
 0x230   :  { %v1400_v3 = vsel %vm1359_vm2, %v1304_v58, %v1399_v61 }
 0x231   :  { %v1028_v53 = vpop.xlane.xlu0 %1027  ;;  %v1401_v10 = vsel %vm1361_vm3, %v1308_v2, %v1400_v3 }
 0x232   :  { %v1292_v54 = vrot.slane %v1028_v53, %v3711_v49  ;;  %v1048_v59 = vpop.xlane.xlu1 %1047 }
 0x233   :  { %v1332_v19 = vrot.slane %v1048_v59, %v3711_v49 }
 0x234   :  { %v1398_v62 = vsel %vm1369_vm7, %v1292_v54, %v1397_v60 }
 0x235   :  { %v1038_v56 = vpop.xlane.xlu0 %1037  ;;  %v3843_v63 = vsel %vm1072_vm13, -inf, %v1398_v62 }
 0x236   :  { %1432 = vst.msk [vmem:[%s4233_s9 + $0x20] sm:$0xff] %vm1427_vm9, %v3843_v63  ;;  %v1447_v26 = vsel %vm1427_vm9, %v3843_v63, -inf  ;;  %v1054_v25 = vpop.xlane.xlu1 %1053  ;;  %v1312_v5 = vrot.slane %v1038_v56, %v3711_v49 }
 0x237   :  { %1448 = vmax.xlane.f32.xlu0 %v1447_v26  ;;  %v1344_v20 = vrot.slane %v1054_v25, %v3711_v49 }
 0x238   :  { %v1402_v15 = vsel %vm1363_vm4, %v1312_v5, %v1401_v10 }
 0x239   :  { %v1046_v7 = vpop.xlane.xlu0 %1045  ;;  %v1403_v4 = vsel %vm1365_vm5, %v1316_v13, %v1402_v15 }
 0x23a   :  { %v1328_v11 = vrot.slane %v1046_v7, %v3711_v49  ;;  %v1052_v12 = vpop.xlane.xlu1 %1051  ;;  %v1404_v33 = vsel %vm1367_vm6, %v1320_v27, %v1403_v4  ;;  %v2422_v4 = vld [vmem:[#allocation7] sm:$0xff]  ;;  %v2423_v27 = vld [vmem:[#allocation7 + $0x8] sm:$0xff] }
 0x23b   :  { %v1340_v17 = vrot.slane %v1052_v12, %v3711_v49 }
 0x23c   :  { %v1406_v8 = vsel %vm1357_vm1, %v1332_v19, %v1328_v11 }
 0x23d   :  { %v1050_v16 = vpop.xlane.xlu0 %1049 }
 0x23e   :  { %v1336_v55 = vrot.slane %v1050_v16, %v3711_v49  ;;  %v1056_v22 = vpop.xlane.xlu1 %1055 }
 0x23f   :  { %v1348_v30 = vrot.slane %v1056_v22, %v3711_v49  ;;  %v2438_v22 = vld [vmem:[#allocation8] sm:$0xff] }
 0x240   :  { %v1407_v9 = vsel %vm1359_vm2, %v1336_v55, %v1406_v8 }
 0x241   :  { %v1408_v28 = vsel %vm1361_vm3, %v1340_v17, %v1407_v9  ;;  %v1044_v14 = vpop.xlane.xlu0 %1043  ;;  %v2964_v9 = vpack.c.bf16 %v2439_v23, %v2438_v22  ;;  %v2450_v23 = vld [vmem:[#allocation8 + $0x60] sm:$0xff] }
 0x242   :  { %v1324_v6 = vrot.slane %v1044_v14, %v3711_v49  ;;  %v1409_v31 = vsel %vm1363_vm4, %v1344_v20, %v1408_v28  ;;  %v1060_v24 = vpop.xlane.xlu1 %1059  ;;  %v3925_v28 = vsub.s32 1, %v3483_v37  ;;  %v3927_v14 = vpack.c.bf16 %v2423_v27, %v2422_v4  ;;  %v2451_v4 = vld [vmem:[#allocation8 + $0x68] sm:$0xff] }
 0x243   :  { %v1410_v39 = vsel %vm1365_vm5, %v1348_v30, %v1409_v31  ;;  %v1356_v42 = vrot.slane %v1060_v24, %v3711_v49  ;;  %2965 = vmatpush3.bf16.msra.mxu1 %v2964_v9  ;;  %v2440_v31 = vld [vmem:[#allocation8 + $0x10] sm:$0xff]  ;;  %v2441_v24 = vld [vmem:[#allocation8 + $0x18] sm:$0xff]  ;;  %v2434_v9 = vld [vmem:[#allocation7 + $0x60] sm:$0xff]  ;;  %v2982_v27 = vpack.c.bf16 %v2451_v4, %v2450_v23 }
 0x244   :  { %v1405_v21 = vsel %vm1369_vm7, %v1324_v6, %v1404_v33  ;;  %2989 = vmatpush3.bf16.msra.mxu0 %v3927_v14  ;;  %2966 = vmatprep.subr.bf16.mxu1 %v3303_v0  ;;  %v2967_v33 = vpack.c.bf16 %v2441_v24, %v2440_v31 }
 0x245   :  { %v1058_v41 = vpop.xlane.xlu0 %1057  ;;  %v1425_v50 = vsel %vm1073_vm14, -inf, %v1405_v21  ;;  %2990 = vmatprep.subr.bf16.mxu0 %v3303_v0  ;;  %v2424_v21 = vld [vmem:[#allocation7 + $0x10] sm:$0xff] }
 0x246   :  { %v1352_v40 = vrot.slane %v1058_v41, %v3711_v49  ;;  %1433 = vst.msk [vmem:[%s4233_s9 + $0x28] sm:$0xff] %vm1427_vm9, %v1425_v50  ;;  %v1450_v44 = vsel %vm1427_vm9, %v1425_v50, -inf }
 0x247   :  { %1451 = vmax.xlane.f32.xlu0 %v1450_v44  ;;  %2968 = vmatpush3.bf16.msra.mxu1 %v2967_v33  ;;  %v3949_v44 = vpack.c.bf16 %v2425_v36, %v2424_v21  ;;  %v2452_v33 = vld [vmem:[#allocation8 + $0x70] sm:$0xff]  ;;  %v2453_v21 = vld [vmem:[#allocation8 + $0x78] sm:$0xff] }
 0x248   :  { %v1411_v45 = vsel %vm1367_vm6, %v1352_v40, %v1410_v39  ;;  %2969 = vmatprep.subr.bf16.mxu1 %v3303_v0  ;;  %v2436_v36 = vld [vmem:[#allocation7 + $0x70] sm:$0xff] }
 0x249   :  { %v1412_v18 = vsel %vm1369_vm7, %v1356_v42, %v1411_v45  ;;  %v3944_v42 = vsub.s32 5, %v3483_v37  ;;  %v2442_v45 = vld [vmem:[#allocation8 + $0x20] sm:$0xff]  ;;  %2992 = vmatpush3.bf16.msra.mxu0 %v3949_v44 }
 0x24a   :  { %v1426_v38 = vsel %vm1074_vm15, -inf, %v1412_v18  ;;  %v2443_v18 = vld [vmem:[#allocation8 + $0x28] sm:$0xff]  ;;  %2993 = vmatprep.subr.bf16.mxu0 %v3303_v0 }
 0x24b   :  { %v1453_v47 = vsel %vm1427_vm9, %v1426_v38, -inf  ;;  %1434 = vst.msk [vmem:[%s4233_s9 + $0x30] sm:$0xff] %vm1427_vm9, %v1426_v38 }
 0x24c   :  { %1454 = vmax.xlane.f32.xlu0 %v1453_v47  ;;  %v3952_v47 = vsub.s32 7, %v3483_v37 }
 0x281   :  { %v1437_v49 = vpop.xlane.xlu1 %1436 }
 0x282   :  { %v1456_v48 = vsub.f32 %v3733_v57, %v1437_v49  ;;  %v2970_v49 = vpack.c.bf16 %v2443_v18, %v2442_v45 }
 0x284   :  { %v1463_v35 = vmul.f32 1.442695, %v1456_v48  ;;  %v2427_v48 = vld [vmem:[#allocation7 + $0x28] sm:$0xff]  ;;  %2971 = vmatpush3.bf16.msra.mxu1 %v2970_v49 }
 0x285   :  { %2972 = vmatprep.subr.bf16.mxu1 %v3303_v0 }
 0x286   :  { %3050 = vpow2.f32 %v1463_v35 }
 0x290   :  { %v3051_v51 = vpop.eup %3050 }
 0x291   :  { %v1440_v52 = vpop.xlane.xlu1 %1439  ;;  %v1477_v34 = vsel %vm1427_vm9, %v3051_v51, 0.0 }
 0x292   :  { %v1457_v53 = vsub.f32 %v3758_v29, %v1440_v52  ;;  %1478 = vadd.xlane.f32.xlu0 %v1477_v34  ;;  %v3960_v52 = vsub.s32 3, %v3483_v37 }
 0x294   :  { %v1465_v54 = vmul.f32 1.442695, %v1457_v53  ;;  %v2444_v53 = vld [vmem:[#allocation8 + $0x30] sm:$0xff] }
 0x296   :  { %3052 = vpow2.f32 %v1465_v54  ;;  %v2445_v54 = vld [vmem:[#allocation8 + $0x38] sm:$0xff] }
 0x2a0   :  { %v3897_v58 = vpop.eup %3052 }
 0x2a1   :  { %v1480_v59 = vsel %vm1427_vm9, %v3897_v58, 0.0 }
 0x2a2   :  { %1481 = vadd.xlane.f32.xlu0 %v1480_v59  ;;  %v2428_v59 = vld [vmem:[#allocation7 + $0x30] sm:$0xff] }
 0x2a8   :  { %v1443_v60 = vpop.xlane.xlu1 %1442 }
 0x2a9   :  { %v1458_v57 = vsub.f32 %v3791_v46, %v1443_v60  ;;  %v2973_v60 = vpack.c.bf16 %v2445_v54, %v2444_v53  ;;  %v3093_v53 = vld [vmem:[%s4224_s0 + $0x8] sm:$0xff] }
 0x2ab   :  { %v1467_v61 = vmul.f32 1.442695, %v1458_v57  ;;  %v2429_v57 = vld [vmem:[#allocation7 + $0x38] sm:$0xff]  ;;  %2974 = vmatpush3.bf16.msra.mxu1 %v2973_v60 }
 0x2ac   :  { %2975 = vmatprep.subr.bf16.mxu1 %v3303_v0 }
 0x2ad   :  { %3054 = vpow2.f32 %v1467_v61 }
 0x2b4   :  { %v1446_v62 = vpop.xlane.xlu0 %1445 }
 0x2b5   :  { %v1459_v56 = vsub.f32 %v3815_v32, %v1446_v62 }
 0x2b7   :  { %v3903_v2 = vpop.eup %3054  ;;  %v1469_v29 = vmul.f32 1.442695, %v1459_v56  ;;  %v3972_v56 = vsub.s32 4, %v3483_v37 }
 0x2b8   :  { %v1483_v26 = vsel %vm1427_vm9, %v3903_v2, 0.0 }
 0x2b9   :  { %3056 = vpow2.f32 %v1469_v29  ;;  %1484 = vadd.xlane.f32.xlu0 %v1483_v26  ;;  %v3975_v29 = vpack.c.bf16 %v2429_v57, %v2428_v59  ;;  %v2446_v26 = vld [vmem:[#allocation8 + $0x40] sm:$0xff] }
 0x2c3   :  { %v3907_v3 = vpop.eup %3056 }
 0x2c4   :  { %v1449_v25 = vpop.xlane.xlu0 %1448  ;;  %v1486_v5 = vsel %vm1427_vm9, %v3907_v3, 0.0 }
 0x2c5   :  { %v1460_v46 = vsub.f32 %v3843_v63, %v1449_v25  ;;  %1487 = vadd.xlane.f32.xlu1 %v1486_v5  ;;  %v2447_v25 = vld [vmem:[#allocation8 + $0x48] sm:$0xff]  ;;  %v2430_v5 = vld [vmem:[#allocation7 + $0x40] sm:$0xff] }
 0x2c7   :  { %v1471_v19 = vmul.f32 1.442695, %v1460_v46  ;;  %v2976_v46 = vpack.c.bf16 %v2447_v25, %v2446_v26  ;;  %v3096_v25 = vld [vmem:[%s4224_s0 + $0x20] sm:$0xff] }
 0x2c9   :  { %3058 = vpow2.f32 %v1471_v19  ;;  %v2431_v19 = vld [vmem:[#allocation7 + $0x48] sm:$0xff]  ;;  %2977 = vmatpush3.bf16.msra.mxu1 %v2976_v46 }
 0x2ca   :  { %2978 = vmatprep.subr.bf16.mxu1 %v3303_v0 }
 0x2d3   :  { %v3912_v32 = vpop.eup %3058 }
 0x2d4   :  { %v1452_v7 = vpop.xlane.xlu0 %1451  ;;  %v1489_v10 = vsel %vm1427_vm9, %v3912_v32, 0.0 }
 0x2d5   :  { %v1461_v11 = vsub.f32 %v1425_v50, %v1452_v7  ;;  %1490 = vadd.xlane.f32.xlu1 %v1489_v10  ;;  %v3947_v50 = vsub.s32 2, %v3483_v37  ;;  %v3982_v10 = vsub.s32 6, %v3483_v37 }
 0x2d7   :  { %v1473_v12 = vmul.f32 1.442695, %v1461_v11  ;;  %v3985_v11 = vpack.c.bf16 %v2431_v19, %v2430_v5 }
 0x2d9   :  { %3060 = vpow2.f32 %v1473_v12  ;;  %v1455_v13 = vpop.xlane.xlu0 %1454 }
 0x2da   :  { %v1462_v15 = vsub.f32 %v1426_v38, %v1455_v13  ;;  %v2426_v38 = vld [vmem:[#allocation7 + $0x20] sm:$0xff] }
 0x2db   :  { %v3963_v34 = vpack.c.bf16 %v2427_v48, %v2426_v38 }
 0x2dc   :  { %v1475_v8 = vmul.f32 1.442695, %v1462_v15  ;;  %v2448_v15 = vld [vmem:[#allocation8 + $0x50] sm:$0xff] }
 0x2dd   :  { %2995 = vmatpush3.bf16.msra.mxu0 %v3963_v34 }
 0x2de   :  { %3062 = vpow2.f32 %v1475_v8  ;;  %2996 = vmatprep.subr.bf16.mxu0 %v3303_v0  ;;  %v2449_v8 = vld [vmem:[#allocation8 + $0x58] sm:$0xff] }
 0x2e1   :  { %2998 = vmatpush3.bf16.msra.mxu0 %v3975_v29 }
 0x2e2   :  { %2999 = vmatprep.subr.bf16.mxu0 %v3303_v0 }
 0x2e3   :  { %v3916_v16 = vpop.eup %3060 }
 0x2e4   :  { %v1492_v63 = vsel %vm1427_vm9, %v3916_v16, 0.0 }
 0x2e5   :  { %1493 = vadd.xlane.f32.xlu1 %v1492_v63  ;;  %v2979_v63 = vpack.c.bf16 %v2449_v8, %v2448_v15  ;;  %3001 = vmatpush3.bf16.msra.mxu0 %v3985_v11 }
 0x2e6   :  { %3002 = vmatprep.subr.bf16.mxu0 %v3303_v0 }
 0x2e7   :  { %2980 = vmatpush3.bf16.msra.mxu1 %v2979_v63 }
 0x2e8   :  { %v3920_v17 = vpop.eup %3062  ;;  %2981 = vmatprep.subr.bf16.mxu1 %v3303_v0 }
 0x2e9   :  { %v1495_v20 = vsel %vm1427_vm9, %v3920_v17, 0.0 }
 0x2ea   :  { %1496 = vadd.xlane.f32.xlu1 %v1495_v20  ;;  %v2432_v20 = vld [vmem:[#allocation7 + $0x50] sm:$0xff] }
 0x2eb   :  { %2983 = vmatpush3.bf16.msra.mxu1 %v2982_v27 }
 0x2ec   :  { %2984 = vmatprep.subr.bf16.mxu1 %v3303_v0 }
 0x31f   :  { %v1479_v55 = vpop.xlane.xlu0 %1478 }
 0x320   :  { %3064 = vrcp.f32 %v1479_v55  ;;  %v2433_v55 = vld [vmem:[#allocation7 + $0x58] sm:$0xff] }
 0x32a   :  { %v3065_v30 = vpop.eup %3064 }
 0x32b   :  { %v3929_v6 = vmul.f32 %v3065_v30, %v3051_v51  ;;  %v2435_v30 = vld [vmem:[#allocation7 + $0x68] sm:$0xff] }
 0x32d   :  { %1512 = vst.msk [vmem:[%s4232_s8] sm:$0xff] %vm1427_vm9, %v3929_v6  ;;  %v1522_v39 = vrot.slane %v3929_v6, %v3490_v43  ;;  %v1529_v41 = vrot.slane %v3929_v6, %v3925_v28  ;;  %v1557_v35 = vrot.slane %v3929_v6, %v3944_v42  ;;  %v1536_v51 = vrot.slane %v3929_v6, %v3947_v50 }
 0x32e   :  { %v1571_v61 = vrot.slane %v3929_v6, %v3952_v47  ;;  %v1543_v62 = vrot.slane %v3929_v6, %v3960_v52  ;;  %v1550_v7 = vrot.slane %v3929_v6, %v3972_v56  ;;  %v1564_v22 = vrot.slane %v3929_v6, %v3982_v10 }
 0x32f   :  { %1524 = vbcast.lane.b32.xlu1 %v1522_v39, 256  ;;  %v1482_v40 = vpop.xlane.xlu0 %1481  ;;  %1531 = vbcast.lane.b32.xlu0 %v1529_v41, 256  ;;  %v4005_v6 = vpack.c.bf16 %v2435_v30, %v2434_v9  ;;  %v2985_v39 = vpack.c.bf16 %v2453_v21, %v2452_v33  ;;  %v2437_v41 = vld [vmem:[#allocation7 + $0x78] sm:$0xff] }
 0x330   :  { %3066 = vrcp.f32 %v1482_v40  ;;  %v4012_v18 = vpack.c.bf16 %v2437_v41, %v2436_v36 }
 0x331   :  { %2986 = vmatpush3.bf16.msra.mxu1 %v2985_v39 }
 0x332   :  { %3011 = vmatprep.subr.bf16.mxu1 %v3303_v0 }
 0x333   :  { %1559 = vbcast.lane.b32.xlu1 %v1557_v35, 256  ;;  %1538 = vbcast.lane.b32.xlu0 %v1536_v51, 256  ;;  %v3092_v35 = vld [vmem:[%s4224_s0] sm:$0xff] }
 0x334   :  { %2866 = vmatmul.mubr.f32.vlgmr.msra.gmra.mrb[0].mxu1 %v3092_v35 }
 0x335   :  { %2868 = vmatprep.mubr.msk.f32.mxu1 %vm3304_vm0, %v3305_v1  ;;  %3019 = vmatpush3.bf16.msra.mxu1 %v3927_v14 }
 0x336   :  { %3012 = vmatprep.subr.bf16.mxu1 %v3303_v0 }
 0x337   :  { %1573 = vbcast.lane.b32.xlu1 %v1571_v61, 256  ;;  %1545 = vbcast.lane.b32.xlu0 %v1543_v62, 256  ;;  %v3095_v62 = vld [vmem:[%s4224_s0 + $0x18] sm:$0xff] }
 0x338   :  { %2869 = vmatmul.mubr.f32.gmra.mrb[2].mxu1 %v3093_v53 }
 0x339   :  { %3020 = vmatpush3.bf16.msra.mxu1 %v3949_v44  ;;  %2871 = vmatprep.mubr.msk.f32.mxu1 %vm3304_vm0, %v3305_v1  ;;  %v3094_v44 = vld [vmem:[%s4224_s0 + $0x10] sm:$0xff] }
 0x33a   :  { %v3067_v12 = vpop.eup %3066  ;;  %3013 = vmatprep.subr.bf16.mxu1 %v3303_v0 }
 0x33b   :  { %v1501_v13 = vmul.f32 %v3067_v12, %v3897_v58  ;;  %1552 = vbcast.lane.b32.xlu0 %v1550_v7, 256  ;;  %v3999_v58 = vpack.c.bf16 %v2433_v55, %v2432_v20  ;;  %v3097_v7 = vld [vmem:[%s4224_s0 + $0x28] sm:$0xff] }
 0x33c   :  { %2872 = vmatmul.mubr.f32.gmra.mrb[4].mxu1 %v3094_v44  ;;  %v3100_v44 = vld [vmem:[#allocation2] sm:$0xff] }
 0x33d   :  { %1513 = vst.msk [vmem:[%s4232_s8 + $0x8] sm:$0xff] %vm1427_vm9, %v1501_v13  ;;  %v1585_v37 = vrot.slane %v1501_v13, %v3925_v28  ;;  %v1592_v31 = vrot.slane %v1501_v13, %v3947_v50  ;;  %v1578_v24 = vrot.slane %v1501_v13, %v3490_v43  ;;  %3004 = vmatpush3.bf16.msra.mxu0 %v3999_v58 }
 0x33e   :  { %3005 = vmatprep.subr.bf16.mxu0 %v3303_v0  ;;  %v1613_v40 = vrot.slane %v1501_v13, %v3944_v42  ;;  %v1599_v45 = vrot.slane %v1501_v13, %v3960_v52  ;;  %v1627_v49 = vrot.slane %v1501_v13, %v3952_v47  ;;  %v1606_v48 = vrot.slane %v1501_v13, %v3972_v56 }
 0x33f   :  { %1587 = vbcast.lane.b32.xlu1 %v1585_v37, 256  ;;  %1566 = vbcast.lane.b32.xlu0 %v1564_v22, 256  ;;  %v1620_v51 = vrot.slane %v1501_v13, %v3982_v10  ;;  %v3098_v13 = vld [vmem:[%s4224_s0 + $0x30] sm:$0xff] }
 0x340   :  { %3021 = vmatpush3.bf16.msra.mxu1 %v3963_v34  ;;  %2874 = vmatprep.mubr.msk.f32.mxu1 %vm3304_vm0, %v3305_v1 }
 0x341   :  { %3007 = vmatpush3.bf16.msra.mxu0 %v4005_v6  ;;  %3014 = vmatprep.subr.bf16.mxu1 %v3303_v0 }
 0x342   :  { %3008 = vmatprep.subr.bf16.mxu0 %v3303_v0  ;;  %2875 = vmatmul.mubr.f32.gmra.mrb[6].mxu1 %v3095_v62 }
 0x343   :  { %1594 = vbcast.lane.b32.xlu1 %v1592_v31, 256  ;;  %1580 = vbcast.lane.b32.xlu0 %v1578_v24, 256 }
 0x344   :  { %3022 = vmatpush3.bf16.msra.mxu1 %v3975_v29  ;;  %2877 = vmatprep.mubr.msk.f32.mxu1 %vm3304_vm0, %v3305_v1 }
 0x345   :  { %3010 = vmatpush3.bf16.msra.mxu0 %v4012_v18  ;;  %3015 = vmatprep.subr.bf16.mxu1 %v3303_v0 }
 0x346   :  { %v1485_v38 = vpop.xlane.xlu0 %1484  ;;  %2878 = vmatmul.mubr.f32.gmra.mrb[8].mxu1 %v3096_v25  ;;  %v3101_v25 = vld [vmem:[#allocation2 + $0x10] sm:$0xff] }
 0x347   :  { %3068 = vrcp.f32 %v1485_v38  ;;  %1615 = vbcast.lane.b32.xlu1 %v1613_v40, 256  ;;  %1601 = vbcast.lane.b32.xlu0 %v1599_v45, 256 }
 0x348   :  { %3023 = vmatpush3.bf16.msra.mxu1 %v3985_v11  ;;  %2880 = vmatprep.mubr.msk.f32.mxu1 %vm3304_vm0, %v3305_v1 }
 0x349   :  { %3016 = vmatprep.subr.bf16.mxu1 %v3303_v0 }
 0x34a   :  { %2881 = vmatmul.mubr.f32.gmra.mrb[10].mxu1 %v3097_v7 }
 0x34b   :  { %1629 = vbcast.lane.b32.xlu1 %v1627_v49, 256  ;;  %1608 = vbcast.lane.b32.xlu0 %v1606_v48, 256 }
 0x34c   :  { %3024 = vmatpush3.bf16.msra.mxu1 %v3999_v58  ;;  %2883 = vmatprep.mubr.msk.f32.mxu1 %vm3304_vm0, %v3305_v1 }
 0x34d   :  { %3017 = vmatprep.subr.bf16.mxu1 %v3303_v0 }
 0x34e   :  { %2884 = vmatmul.mubr.f32.gmra.mrb[12].mxu1 %v3098_v13 }
 0x34f   :  { %1622 = vbcast.lane.b32.xlu0 %v1620_v51, 256  ;;  %2927 = vmatprep.mubr.msk.f32.mxu1 %vm3304_vm0, %v3305_v1 }
 0x350   :  { %3025 = vmatpush3.bf16.msra.mxu1 %v4005_v6 }
 0x351   :  { %v3069_v54 = vpop.eup %3068  ;;  %3018 = vmatprep.subr.bf16.mxu1 %v3303_v0 }
 0x352   :  { %v1503_v59 = vmul.f32 %v3069_v54, %v3903_v2  ;;  %v1488_v60 = vpop.xlane.xlu1 %1487 }
 0x353   :  { %3070 = vrcp.f32 %v1488_v60 }
 0x354   :  { %1514 = vst.msk [vmem:[%s4232_s8 + $0x10] sm:$0xff] %vm1427_vm9, %v1503_v59  ;;  %v1641_v14 = vrot.slane %v1503_v59, %v3925_v28  ;;  %v1634_v57 = vrot.slane %v1503_v59, %v3490_v43  ;;  %v1648_v2 = vrot.slane %v1503_v59, %v3947_v50  ;;  %v1655_v61 = vrot.slane %v1503_v59, %v3960_v52 }
 0x355   :  { %v1669_v34 = vrot.slane %v1503_v59, %v3944_v42  ;;  %v1662_v26 = vrot.slane %v1503_v59, %v3972_v56  ;;  %v1676_v46 = vrot.slane %v1503_v59, %v3982_v10  ;;  %v1683_v11 = vrot.slane %v1503_v59, %v3952_v47  ;;  %3026 = vmatpush3.bf16.msra.mxu1 %v4012_v18 }
 0x356   :  { %1643 = vbcast.lane.b32.xlu1 %v1641_v14, 256  ;;  %1636 = vbcast.lane.b32.xlu0 %v1634_v57, 256  ;;  %v3099_v14 = vld [vmem:[#allocation2 + $0x8] sm:$0xff] }
 0x35a   :  { %1650 = vbcast.lane.b32.xlu1 %v1648_v2, 256  ;;  %1657 = vbcast.lane.b32.xlu0 %v1655_v61, 256 }
 0x35d   :  { %v3071_v5 = vpop.eup %3070 }
 0x35e   :  { %v1505_v29 = vmul.f32 %v3071_v5, %v3907_v3  ;;  %1671 = vbcast.lane.b32.xlu1 %v1669_v34, 256  ;;  %1664 = vbcast.lane.b32.xlu0 %v1662_v26, 256  ;;  %v3102_v5 = vld [vmem:[#allocation2 + $0x28] sm:$0xff] }
 0x360   :  { %1515 = vst.msk [vmem:[%s4232_s8 + $0x18] sm:$0xff] %vm1427_vm9, %v1505_v29  ;;  %v1697_v19 = vrot.slane %v1505_v29, %v3925_v28  ;;  %v1704_v12 = vrot.slane %v1505_v29, %v3947_v50  ;;  %v1711_v15 = vrot.slane %v1505_v29, %v3960_v52  ;;  %v1690_v8 = vrot.slane %v1505_v29, %v3490_v43 }
 0x361   :  { %v1718_v63 = vrot.slane %v1505_v29, %v3972_v56  ;;  %v1739_v20 = vrot.slane %v1505_v29, %v3952_v47  ;;  %v1725_v0 = vrot.slane %v1505_v29, %v3944_v42  ;;  %v1732_v23 = vrot.slane %v1505_v29, %v3982_v10 }
 0x362   :  { %1678 = vbcast.lane.b32.xlu0 %v1676_v46, 256  ;;  %1699 = vbcast.lane.b32.xlu1 %v1697_v19, 256  ;;  %v1491_v3 = vpop.xlane.xlu1 %1490 }
 0x363   :  { %3072 = vrcp.f32 %v1491_v3 }
 0x366   :  { %1685 = vbcast.lane.b32.xlu0 %v1683_v11, 256  ;;  %1706 = vbcast.lane.b32.xlu1 %v1704_v12, 256 }
 0x36a   :  { %1713 = vbcast.lane.b32.xlu1 %v1711_v15, 256  ;;  %1692 = vbcast.lane.b32.xlu0 %v1690_v8, 256 }
 0x36d   :  { %v3073_v55 = vpop.eup %3072 }
 0x36e   :  { %v1507_v37 = vmul.f32 %v3073_v55, %v3912_v32  ;;  %1720 = vbcast.lane.b32.xlu1 %v1718_v63, 256  ;;  %1741 = vbcast.lane.b32.xlu0 %v1739_v20, 256  ;;  %v3104_v63 = vld [vmem:[#allocation2 + $0x38] sm:$0xff] }
 0x370   :  { %1516 = vst.msk [vmem:[%s4232_s8 + $0x20] sm:$0xff] %vm1427_vm9, %v1507_v37  ;;  %v1746_v22 = vrot.slane %v1507_v37, %v3490_v43  ;;  %v1760_v4 = vrot.slane %v1507_v37, %v3947_v50  ;;  %v1753_v9 = vrot.slane %v1507_v37, %v3925_v28  ;;  %v1774_v27 = vrot.slane %v1507_v37, %v3972_v56 }
 0x371   :  { %v1767_v30 = vrot.slane %v1507_v37, %v3960_v52  ;;  %v1795_v31 = vrot.slane %v1507_v37, %v3952_v47  ;;  %v1781_v33 = vrot.slane %v1507_v37, %v3944_v42  ;;  %v1788_v41 = vrot.slane %v1507_v37, %v3982_v10 }
 0x372   :  { %1727 = vbcast.lane.b32.xlu1 %v1725_v0, 256  ;;  %1748 = vbcast.lane.b32.xlu0 %v1746_v22, 256  ;;  %v1494_v58 = vpop.xlane.xlu1 %1493 }
 0x373   :  { %3074 = vrcp.f32 %v1494_v58 }
 0x376   :  { %1734 = vbcast.lane.b32.xlu1 %v1732_v23, 256  ;;  %1762 = vbcast.lane.b32.xlu0 %v1760_v4, 256 }
 0x377   :  { %v1497_v32 = vpop.xlane.xlu1 %1496 }
 0x378   :  { %3076 = vrcp.f32 %v1497_v32 }
 0x37a   :  { %1755 = vbcast.lane.b32.xlu1 %v1753_v9, 256  ;;  %1776 = vbcast.lane.b32.xlu0 %v1774_v27, 256 }
 0x37d   :  { %v3075_v24 = vpop.eup %3074 }
 0x37e   :  { %v1509_v6 = vmul.f32 %v3075_v24, %v3916_v16  ;;  %1769 = vbcast.lane.b32.xlu1 %v1767_v30, 256  ;;  %1797 = vbcast.lane.b32.xlu0 %v1795_v31, 256 }
 0x380   :  { %1517 = vst.msk [vmem:[%s4232_s8 + $0x28] sm:$0xff] %vm1427_vm9, %v1509_v6  ;;  %v1802_v21 = vrot.slane %v1509_v6, %v3490_v43  ;;  %v1816_v16 = vrot.slane %v1509_v6, %v3947_v50  ;;  %v1809_v40 = vrot.slane %v1509_v6, %v3925_v28  ;;  %v1830_v45 = vrot.slane %v1509_v6, %v3972_v56 }
 0x381   :  { %v1823_v18 = vrot.slane %v1509_v6, %v3960_v52  ;;  %v1837_v38 = vrot.slane %v1509_v6, %v3944_v42  ;;  %v1844_v48 = vrot.slane %v1509_v6, %v3982_v10 }
 0x382   :  { %v3077_v36 = vpop.eup %3076  ;;  %1783 = vbcast.lane.b32.xlu1 %v1781_v33, 256  ;;  %1804 = vbcast.lane.b32.xlu0 %v1802_v21, 256 }
 0x383   :  { %v1511_v39 = vmul.f32 %v3077_v36, %v3920_v17  ;;  %v1851_v17 = vrot.slane %v1509_v6, %v3952_v47 }
 0x385   :  { %1518 = vst.msk [vmem:[%s4232_s8 + $0x30] sm:$0xff] %vm1427_vm9, %v1511_v39  ;;  %v1858_v49 = vrot.slane %v1511_v39, %v3490_v43  ;;  %v1872_v35 = vrot.slane %v1511_v39, %v3947_v50  ;;  %v1865_v51 = vrot.slane %v1511_v39, %v3925_v28  ;;  %v1900_v53 = vrot.slane %v1511_v39, %v3982_v10  ;;  %s3307_s8 = smov [#allocation11]  }
 0x386   :  { %1790 = vbcast.lane.b32.xlu1 %v1788_v41, 256  ;;  %1818 = vbcast.lane.b32.xlu0 %v1816_v16, 256  ;;  %v1879_v54 = vrot.slane %v1511_v39, %v3960_v52  ;;  %v1886_v59 = vrot.slane %v1511_v39, %v3972_v56  ;;  %v1893_v28 = vrot.slane %v1511_v39, %v3944_v42  ;;  %v3103_v42 = vld [vmem:[#allocation2 + $0x18] sm:$0xff]  ;;  %v3106_v41 = vld [vmem:[#allocation2 + $0x30] sm:$0xff]  ;;  %s2685_s10 = sshll.u32 %s3307_s8, 4  ;;  %s2686_s10 = int_to_ptr.vmem [resolvable:$true] %s2685_s10 }
 0x387   :  { %v1907_v7 = vrot.slane %v1511_v39, %v3952_v47  ;;  %v3105_v47 = vld [vmem:[#allocation2 + $0x20] sm:$0xff]  ;;  %s3243_s14 = scalar_lea.vmem %s2686_s10, 896  ;;  %p3248_p5 = scmp.lt.s32.totalorder %s2686_s10, %s2686_s10 }
 0x388   :  { %p3244_p4 = scmp.ne.s32.totalorder %s2686_s10, %s3243_s14  ;;  %p3249_p6 = scmp.lt.s32.totalorder %s3243_s14, %s3243_s14 }
 0x38a   :  { %1811 = vbcast.lane.b32.xlu1 %v1809_v40, 256  ;;  %1832 = vbcast.lane.b32.xlu0 %v1830_v45, 256  ;;  %v3107_v40 = vld [vmem:[#allocation2 + $0x48] sm:$0xff]  ;;  %p3250_p7 = por %p3249_p6, %p3248_p5 }
 0x38c   :  { %p3251_p8 = pnand %p3250_p7, %p3244_p4 }
 0x38e   :  { %1825 = vbcast.lane.b32.xlu1 %v1823_v18, 256  ;;  %1853 = vbcast.lane.b32.xlu0 %v1851_v17, 256 }
 0x392   :  { %1839 = vbcast.lane.b32.xlu1 %v1837_v38, 256  ;;  %1860 = vbcast.lane.b32.xlu0 %v1858_v49, 256 }
 0x396   :  { %1846 = vbcast.lane.b32.xlu1 %v1844_v48, 256  ;;  %1874 = vbcast.lane.b32.xlu0 %v1872_v35, 256 }
 0x39a   :  { %1867 = vbcast.lane.b32.xlu1 %v1865_v51, 256  ;;  %1902 = vbcast.lane.b32.xlu0 %v1900_v53, 256 }
 0x39e   :  { %1881 = vbcast.lane.b32.xlu1 %v1879_v54, 256 }
 0x3a1   :  { %v1532_v43 = vpop.permute.xlu0 %1531  ;;  %v1525_v60 = vpop.permute.xlu1 %1524 }
 0x3a2   :  { %v1912_v57 = vmul.f32 %v3099_v14, %v1532_v43  ;;  %v1911_v2 = vmul.f32 %v3100_v44, %v1525_v60  ;;  %1888 = vbcast.lane.b32.xlu1 %v1886_v59, 256 }
 0x3a4   :  { %v1973_v50 = vrot.slane %v1912_v57, 4  ;;  %v1967_v61 = vrot.slane %v1911_v2, 4 }
 0x3a5   :  { %v1539_v62 = vpop.permute.xlu0 %1538  ;;  %v1560_v10 = vpop.permute.xlu1 %1559 }
 0x3a6   :  { %v1974_v34 = vadd.f32 %v1973_v50, %v1912_v57  ;;  %v1968_v26 = vadd.f32 %v1967_v61, %v1911_v2  ;;  %v1913_v52 = vmul.f32 %v3101_v25, %v1539_v62  ;;  %v1916_v29 = vmul.f32 %v3102_v5, %v1560_v10  ;;  %1895 = vbcast.lane.b32.xlu1 %v1893_v28, 256  ;;  %v3108_v2 = vld [vmem:[#allocation2 + $0x40] sm:$0xff]  ;;  %v3109_v61 = vld [vmem:[#allocation2 + $0x50] sm:$0xff] }
 0x3a8   :  { %v1975_v56 = vrot.slane %v1974_v34, 2  ;;  %v1979_v46 = vrot.slane %v1913_v52, 4  ;;  %v1997_v19 = vrot.slane %v1916_v29, 4  ;;  %v1969_v3 = vrot.slane %v1968_v26, 2 }
 0x3a9   :  { %v1546_v11 = vpop.permute.xlu0 %1545  ;;  %v1574_v12 = vpop.permute.xlu1 %1573 }
 0x3aa   :  { %v1980_v13 = vadd.f32 %v1979_v46, %v1913_v52  ;;  %v1998_v15 = vadd.f32 %v1997_v19, %v1916_v29  ;;  %1909 = vbcast.lane.b32.xlu1 %v1907_v7, 256  ;;  %v1914_v8 = vmul.f32 %v3103_v42, %v1546_v11  ;;  %v1918_v20 = vmul.f32 %v3104_v63, %v1574_v12 }
 0x3ab   :  { %v1976_v55 = vadd.f32 %v1975_v56, %v1974_v34  ;;  %v1970_v0 = vadd.f32 %v1969_v3, %v1968_v26 }
 0x3ac   :  { %v1981_v37 = vrot.slane %v1980_v13, 2  ;;  %v1999_v22 = vrot.slane %v1998_v15, 2  ;;  %v1985_v58 = vrot.slane %v1914_v8, 4  ;;  %v2009_v23 = vrot.slane %v1918_v20, 4 }
 0x3ad   :  { %v1553_v4 = vpop.permute.xlu0 %1552  ;;  %v1977_v30 = vrot.slane %v1976_v55, 1  ;;  %v1971_v24 = vrot.slane %v1970_v0, 1 }
 0x3ae   :  { %v1982_v32 = vadd.f32 %v1981_v37, %v1980_v13  ;;  %v1986_v9 = vadd.f32 %v1985_v58, %v1914_v8  ;;  %v1915_v27 = vmul.f32 %v3105_v47, %v1553_v4  ;;  %v2010_v31 = vadd.f32 %v2009_v23, %v1918_v20  ;;  %v3110_v8 = vld [vmem:[#allocation2 + $0x58] sm:$0xff]  ;;  %v3111_v20 = vld [vmem:[#allocation2 + $0x68] sm:$0xff] }
 0x3af   :  { %v2000_v6 = vadd.f32 %v1999_v22, %v1998_v15  ;;  %v1978_v49 = vadd.f32 %v1977_v30, %v1976_v55  ;;  %v1972_v53 = vadd.f32 %v1971_v24, %v1970_v0 }
 0x3b0   :  { %v1987_v33 = vrot.slane %v1986_v9, 2  ;;  %v1991_v21 = vrot.slane %v1915_v27, 4  ;;  %v1983_v18 = vrot.slane %v1982_v32, 1  ;;  %v2011_v48 = vrot.slane %v2010_v31, 2 }
 0x3b1   :  { %v1567_v36 = vpop.permute.xlu0 %1566  ;;  %v1588_v39 = vpop.permute.xlu1 %1587  ;;  %v2001_v54 = vrot.slane %v2000_v6, 1  ;;  %v2359_v5 = vsel %vm1357_vm1, %v1978_v49, %v1972_v53  ;;  %v3114_v53 = vld [vmem:[#allocation2 + $0x70] sm:$0xff] }
 0x3b2   :  { %v1917_v16 = vmul.f32 %v3106_v41, %v1567_v36  ;;  %v1920_v45 = vmul.f32 %v3107_v40, %v1588_v39  ;;  %v1988_v17 = vadd.f32 %v1987_v33, %v1986_v9  ;;  %v1992_v38 = vadd.f32 %v1991_v21, %v1915_v27  ;;  %v3112_v36 = vld [vmem:[#allocation2 + $0x60] sm:$0xff]  ;;  %v3113_v41 = vld [vmem:[#allocation2 + $0x78] sm:$0xff] }
 0x3b3   :  { %v1984_v62 = vadd.f32 %v1983_v18, %v1982_v32  ;;  %v2012_v34 = vadd.f32 %v2011_v48, %v2010_v31  ;;  %v2002_v3 = vadd.f32 %v2001_v54, %v2000_v6 }
 0x3b4   :  { %v2003_v35 = vrot.slane %v1917_v16, 4  ;;  %v2021_v51 = vrot.slane %v1920_v45, 4  ;;  %v1989_v59 = vrot.slane %v1988_v17, 1  ;;  %v1993_v43 = vrot.slane %v1992_v38, 2 }
 0x3b5   :  { %v1581_v60 = vpop.permute.xlu0 %1580  ;;  %v1595_v14 = vpop.permute.xlu1 %1594  ;;  %v2360_v15 = vsel %vm1359_vm2, %v1984_v62, %v2359_v5  ;;  %v2013_v37 = vrot.slane %v2012_v34, 1 }
 0x3b6   :  { %v2004_v57 = vadd.f32 %v2003_v35, %v1917_v16  ;;  %v2022_v44 = vadd.f32 %v2021_v51, %v1920_v45  ;;  %v1919_v50 = vmul.f32 %v3108_v2, %v1581_v60  ;;  %v1921_v28 = vmul.f32 %v3109_v61, %v1595_v14 }
 0x3b7   :  { %v1994_v10 = vadd.f32 %v1993_v43, %v1992_v38  ;;  %v1990_v29 = vadd.f32 %v1989_v59, %v1988_v17  ;;  %v2014_v40 = vadd.f32 %v2013_v37, %v2012_v34 }
 0x3b8   :  { %v2005_v26 = vrot.slane %v2004_v57, 2  ;;  %v2015_v25 = vrot.slane %v1919_v50, 4  ;;  %v2027_v52 = vrot.slane %v1921_v28, 4  ;;  %v2023_v46 = vrot.slane %v2022_v44, 2 }
 0x3b9   :  { %v1995_v56 = vrot.slane %v1994_v10, 1  ;;  %v1602_v19 = vpop.permute.xlu0 %1601  ;;  %v1616_v7 = vpop.permute.xlu1 %1615  ;;  %v2361_v23 = vsel %vm1361_vm3, %v1990_v29, %v2360_v15 }
 0x3ba   :  { %v2006_v11 = vadd.f32 %v2005_v26, %v2004_v57  ;;  %v2016_v12 = vadd.f32 %v2015_v25, %v1919_v50  ;;  %v2028_v13 = vadd.f32 %v2027_v52, %v1921_v28  ;;  %v1922_v63 = vmul.f32 %v3110_v8, %v1602_v19 }
 0x3bb   :  { %v1996_v42 = vadd.f32 %v1995_v56, %v1994_v10  ;;  %v1924_v55 = vmul.f32 %v3111_v20, %v1616_v7  ;;  %v2024_v4 = vadd.f32 %v2023_v46, %v2022_v44 }
 0x3bc   :  { %v2007_v0 = vrot.slane %v2006_v11, 1  ;;  %v2017_v22 = vrot.slane %v2016_v12, 2  ;;  %v2029_v58 = vrot.slane %v2028_v13, 2  ;;  %v2033_v32 = vrot.slane %v1922_v63, 4 }
 0x3bd   :  { %v2045_v9 = vrot.slane %v1924_v55, 4  ;;  %v1609_v47 = vpop.permute.xlu0 %1608  ;;  %v1630_v27 = vpop.permute.xlu1 %1629  ;;  %v2362_v30 = vsel %vm1363_vm4, %v1996_v42, %v2361_v23  ;;  %v2025_v35 = vrot.slane %v2024_v4, 1 }
 0x3be   :  { %v2008_v31 = vadd.f32 %v2007_v0, %v2006_v11  ;;  %v2018_v24 = vadd.f32 %v2017_v22, %v2016_v12  ;;  %v2030_v6 = vadd.f32 %v2029_v58, %v2028_v13  ;;  %v2034_v33 = vadd.f32 %v2033_v32, %v1922_v63  ;;  %v3116_v12 = vld [vmem:[#allocation2 + $0x88] sm:$0xff] }
 0x3bf   :  { %v2046_v21 = vadd.f32 %v2045_v9, %v1924_v55  ;;  %v1923_v39 = vmul.f32 %v3112_v36, %v1609_v47  ;;  %v1926_v16 = vmul.f32 %v3113_v41, %v1630_v27  ;;  %v2363_v48 = vsel %vm1365_vm5, %v2002_v3, %v2362_v30  ;;  %v3115_v3 = vld [vmem:[#allocation2 + $0x80] sm:$0xff]  ;;  %v3117_v9 = vld [vmem:[#allocation2 + $0x98] sm:$0xff]  ;;  %v3118_v27 = vld [vmem:[#allocation2 + $0x90] sm:$0xff] }
 0x3c0   :  { %v2019_v45 = vrot.slane %v2018_v24, 1  ;;  %v2035_v18 = vrot.slane %v2034_v33, 2  ;;  %v2364_v59 = vsel %vm1367_vm6, %v2008_v31, %v2363_v48  ;;  %v2031_v43 = vrot.slane %v2030_v6, 1  ;;  %v3119_v48 = vld [vmem:[#allocation2 + $0xa0] sm:$0xff] }
 0x3c1   :  { %v2039_v17 = vrot.slane %v1923_v39, 4  ;;  %v2057_v38 = vrot.slane %v1926_v16, 4  ;;  %v1623_v49 = vpop.permute.xlu0 %1622  ;;  %v2047_v51 = vrot.slane %v2046_v21, 2  ;;  %v2365_v50 = vsel %vm1369_vm7, %v2014_v40, %v2364_v59 }
 0x3c2   :  { %v1925_v54 = vmul.f32 %v3114_v53, %v1623_v49  ;;  %v2036_v60 = vadd.f32 %v2035_v18, %v2034_v33  ;;  %v2020_v44 = vadd.f32 %v2019_v45, %v2018_v24  ;;  %2415 = vst [vmem:[#allocation11] sm:$0xff] %v2365_v50  ;;  %2919 = vmatmul.mubr.f32.vlgmr.msra.gmra.mrb[14].mxu0 %v2365_v50 }
 0x3c3   :  { %v2040_v14 = vadd.f32 %v2039_v17, %v1923_v39  ;;  %v2058_v57 = vadd.f32 %v2057_v38, %v1926_v16  ;;  %v2026_v62 = vadd.f32 %v2025_v35, %v2024_v4  ;;  %v2048_v10 = vadd.f32 %v2047_v51, %v2046_v21  ;;  %2921 = vmatprep.mubr.msk.f32.mxu0 %vm3304_vm0, %v3305_v1  ;;  %v3120_v51 = vld [vmem:[#allocation2 + $0xa8] sm:$0xff] }
 0x3c4   :  { %v2051_v2 = vrot.slane %v1925_v54, 4  ;;  %v2037_v61 = vrot.slane %v2036_v60, 1  ;;  %v2032_v25 = vadd.f32 %v2031_v43, %v2030_v6 }
 0x3c5   :  { %v2041_v28 = vrot.slane %v2040_v14, 2  ;;  %v2059_v34 = vrot.slane %v2058_v57, 2  ;;  %v2366_v5 = vsel %vm1357_vm1, %v2026_v62, %v2020_v44  ;;  %v2049_v15 = vrot.slane %v2048_v10, 1 }
 0x3c6   :  { %v2052_v26 = vadd.f32 %v2051_v2, %v1925_v54  ;;  %v2038_v29 = vadd.f32 %v2037_v61, %v2036_v60  ;;  %v2367_v63 = vsel %vm1359_vm2, %v2032_v25, %v2366_v5  ;;  %v3121_v25 = vld [vmem:[#allocation2 + $0xb0] sm:$0xff]  ;;  %v3122_v5 = vld [vmem:[#allocation2 + $0xc8] sm:$0xff] }
 0x3c7   :  { %v2042_v52 = vadd.f32 %v2041_v28, %v2040_v14  ;;  %v2060_v42 = vadd.f32 %v2059_v34, %v2058_v57  ;;  %v2050_v31 = vadd.f32 %v2049_v15, %v2048_v10 }
 0x3c8   :  { %v2053_v56 = vrot.slane %v2052_v26, 2  ;;  %v1637_v46 = vpop.permute.xlu0 %1636  ;;  %v1644_v19 = vpop.permute.xlu1 %1643  ;;  %v2368_v23 = vsel %vm1361_vm3, %v2038_v29, %v2367_v63  ;;  %v3124_v63 = vld [vmem:[#allocation2 + $0xd0] sm:$0xff] }
 0x3c9   :  { %v2043_v7 = vrot.slane %v2042_v52, 1  ;;  %v1927_v11 = vmul.f32 %v3115_v3, %v1637_v46  ;;  %v1928_v13 = vmul.f32 %v3116_v12, %v1644_v19  ;;  %v2061_v24 = vrot.slane %v2060_v42, 1 }
 0x3ca   :  { %v2054_v8 = vadd.f32 %v2053_v56, %v2052_v26 }
 0x3cb   :  { %v2044_v20 = vadd.f32 %v2043_v7, %v2042_v52  ;;  %v2063_v55 = vrot.slane %v1927_v11, 4  ;;  %v2069_v37 = vrot.slane %v1928_v13, 4  ;;  %v2062_v54 = vadd.f32 %v2061_v24, %v2060_v42  ;;  %v3123_v42 = vld [vmem:[#allocation2 + $0xb8] sm:$0xff] }
 0x3cc   :  { %v2055_v0 = vrot.slane %v2054_v8, 1  ;;  %v1658_v22 = vpop.permute.xlu0 %1657  ;;  %v1651_v58 = vpop.permute.xlu1 %1650 }
 0x3cd   :  { %v2064_v4 = vadd.f32 %v2063_v55, %v1927_v11  ;;  %v2070_v32 = vadd.f32 %v2069_v37, %v1928_v13  ;;  %v1930_v47 = vmul.f32 %v3117_v9, %v1658_v22  ;;  %v1929_v30 = vmul.f32 %v3118_v27, %v1651_v58 }
 0x3ce   :  { %v2056_v6 = vadd.f32 %v2055_v0, %v2054_v8  ;;  %v2369_v33 = vsel %vm1363_vm4, %v2044_v20, %v2368_v23 }
 0x3cf   :  { %v2065_v21 = vrot.slane %v2064_v4, 2  ;;  %v2071_v36 = vrot.slane %v2070_v32, 2  ;;  %v2081_v39 = vrot.slane %v1930_v47, 4  ;;  %v2075_v41 = vrot.slane %v1929_v30, 4 }
 0x3d0   :  { %v1665_v16 = vpop.permute.xlu0 %1664  ;;  %v1672_v40 = vpop.permute.xlu1 %1671  ;;  %v2370_v45 = vsel %vm1365_vm5, %v2050_v31, %v2369_v33 }
 0x3d1   :  { %v2066_v18 = vadd.f32 %v2065_v21, %v2064_v4  ;;  %v2072_v17 = vadd.f32 %v2071_v36, %v2070_v32  ;;  %v2082_v38 = vadd.f32 %v2081_v39, %v1930_v47  ;;  %v2076_v49 = vadd.f32 %v2075_v41, %v1929_v30  ;;  %v3126_v21 = vld [vmem:[#allocation2 + $0xd8] sm:$0xff] }
 0x3d2   :  { %v1931_v35 = vmul.f32 %v3119_v48, %v1665_v16  ;;  %v1932_v53 = vmul.f32 %v3120_v51, %v1672_v40  ;;  %v2371_v59 = vsel %vm1367_vm6, %v2056_v6, %v2370_v45  ;;  %v3125_v6 = vld [vmem:[#allocation2 + $0xc0] sm:$0xff] }
 0x3d3   :  { %v2083_v43 = vrot.slane %v2082_v38, 2  ;;  %v2077_v60 = vrot.slane %v2076_v49, 2  ;;  %v2372_v44 = vsel %vm1369_vm7, %v2062_v54, %v2371_v59  ;;  %v2067_v61 = vrot.slane %v2066_v18, 1 }
 0x3d4   :  { %v2087_v14 = vrot.slane %v1931_v35, 4  ;;  %v2093_v57 = vrot.slane %v1932_v53, 4  ;;  %v1679_v2 = vpop.permute.xlu0 %1678  ;;  %v1700_v50 = vpop.permute.xlu1 %1699  ;;  %v2073_v28 = vrot.slane %v2072_v17, 1  ;;  %2416 = vst [vmem:[#allocation11 + $0x8] sm:$0xff] %v2372_v44  ;;  %2922 = vmatmul.mubr.f32.gmra.mrb[16].mxu0 %v2372_v44 }
 0x3d5   :  { %v2084_v62 = vadd.f32 %v2083_v43, %v2082_v38  ;;  %v2078_v10 = vadd.f32 %v2077_v60, %v2076_v49  ;;  %v1933_v52 = vmul.f32 %v3121_v25, %v1679_v2  ;;  %v1936_v29 = vmul.f32 %v3122_v5, %v1700_v50  ;;  %2924 = vmatprep.mubr.msk.f32.mxu0 %vm3304_vm0, %v3305_v1  ;;  %v3128_v2 = vld [vmem:[#allocation2 + $0xe0] sm:$0xff] }
 0x3d6   :  { %v2088_v34 = vadd.f32 %v2087_v14, %v1931_v35  ;;  %v2094_v26 = vadd.f32 %v2093_v57, %v1932_v53  ;;  %v2068_v13 = vadd.f32 %v2067_v61, %v2066_v18  ;;  %v2074_v15 = vadd.f32 %v2073_v28, %v2072_v17  ;;  %v3127_v57 = vld [vmem:[#allocation2 + $0xf8] sm:$0xff] }
 0x3d7   :  { %v2079_v56 = vrot.slane %v2078_v10, 1  ;;  %v2099_v7 = vrot.slane %v1933_v52, 4  ;;  %v2117_v3 = vrot.slane %v1936_v29, 4  ;;  %v2085_v55 = vrot.slane %v2084_v62, 1 }
 0x3d8   :  { %v2089_v46 = vrot.slane %v2088_v34, 2  ;;  %v2095_v19 = vrot.slane %v2094_v26, 2  ;;  %v1686_v11 = vpop.permute.xlu0 %1685  ;;  %v1707_v12 = vpop.permute.xlu1 %1706  ;;  %v2373_v39 = vsel %vm1357_vm1, %v2074_v15, %v2068_v13  ;;  %v3130_v13 = vld [vmem:[#allocation2 + $0xe8] sm:$0xff] }
 0x3d9   :  { %v1934_v8 = vmul.f32 %v3123_v42, %v1686_v11  ;;  %v1937_v20 = vmul.f32 %v3124_v63, %v1707_v12  ;;  %v2100_v22 = vadd.f32 %v2099_v7, %v1933_v52  ;;  %v2118_v58 = vadd.f32 %v2117_v3, %v1936_v29 }
 0x3da   :  { %v2090_v37 = vadd.f32 %v2089_v46, %v2088_v34  ;;  %v2096_v0 = vadd.f32 %v2095_v19, %v2094_v26  ;;  %v2080_v32 = vadd.f32 %v2079_v56, %v2078_v10  ;;  %v2086_v41 = vadd.f32 %v2085_v55, %v2084_v62  ;;  %v3129_v19 = vld [vmem:[#allocation2 + $0x100] sm:$0xff] }
 0x3db   :  { %v2105_v23 = vrot.slane %v1934_v8, 4  ;;  %v2123_v4 = vrot.slane %v1937_v20, 4  ;;  %v2101_v47 = vrot.slane %v2100_v22, 2  ;;  %v2119_v45 = vrot.slane %v2118_v58, 2 }
 0x3dc   :  { %v2091_v9 = vrot.slane %v2090_v37, 1  ;;  %v1693_v27 = vpop.permute.xlu0 %1692  ;;  %v1714_v30 = vpop.permute.xlu1 %1713  ;;  %v2097_v16 = vrot.slane %v2096_v0, 1  ;;  %v2374_v49 = vsel %vm1359_vm2, %v2080_v32, %v2373_v39  ;;  %v3131_v32 = vld [vmem:[#allocation2 + $0x110] sm:$0xff] }
 0x3dd   :  { %v2106_v31 = vadd.f32 %v2105_v23, %v1934_v8  ;;  %v2124_v24 = vadd.f32 %v2123_v4, %v1937_v20  ;;  %v1935_v33 = vmul.f32 %v3125_v6, %v1693_v27  ;;  %v1938_v36 = vmul.f32 %v3126_v21, %v1714_v30 }
 0x3de   :  { %v2102_v40 = vadd.f32 %v2101_v47, %v2100_v22  ;;  %v2092_v48 = vadd.f32 %v2091_v9, %v2090_v37  ;;  %v2098_v14 = vadd.f32 %v2097_v16, %v2096_v0  ;;  %v2120_v61 = vadd.f32 %v2119_v45, %v2118_v58 }
 0x3df   :  { %v2107_v18 = vrot.slane %v2106_v31, 2  ;;  %v2111_v17 = vrot.slane %v1935_v33, 4  ;;  %v2129_v38 = vrot.slane %v1938_v36, 4  ;;  %v2125_v35 = vrot.slane %v2124_v24, 2 }
 0x3e0   :  { %v1742_v51 = vpop.permute.xlu0 %1741  ;;  %v1721_v53 = vpop.permute.xlu1 %1720  ;;  %v2103_v54 = vrot.slane %v2102_v40, 1  ;;  %v2375_v10 = vsel %vm1361_vm3, %v2086_v41, %v2374_v49  ;;  %v2121_v8 = vrot.slane %v2120_v61, 1 }
 0x3e1   :  { %v2108_v59 = vadd.f32 %v2107_v18, %v2106_v31  ;;  %v2112_v43 = vadd.f32 %v2111_v17, %v1935_v33  ;;  %v2130_v60 = vadd.f32 %v2129_v38, %v1938_v36  ;;  %v1942_v44 = vmul.f32 %v3127_v57, %v1742_v51  ;;  %v3132_v33 = vld [vmem:[#allocation2 + $0xf0] sm:$0xff] }
 0x3e2   :  { %v1939_v50 = vmul.f32 %v3128_v2, %v1721_v53  ;;  %v2126_v34 = vadd.f32 %v2125_v35, %v2124_v24  ;;  %v2104_v56 = vadd.f32 %v2103_v54, %v2102_v40  ;;  %v2376_v3 = vsel %vm1363_vm4, %v2092_v48, %v2375_v10  ;;  %v3133_v35 = vld [vmem:[#allocation2 + $0x120] sm:$0xff] }
 0x3e3   :  { %v2109_v28 = vrot.slane %v2108_v59, 1  ;;  %v2113_v62 = vrot.slane %v2112_v43, 2  ;;  %v2131_v26 = vrot.slane %v2130_v60, 2  ;;  %v2153_v25 = vrot.slane %v1942_v44, 4 }
 0x3e4   :  { %v2135_v52 = vrot.slane %v1939_v50, 4  ;;  %v1749_v5 = vpop.permute.xlu0 %1748  ;;  %v1728_v29 = vpop.permute.xlu1 %1727  ;;  %v2377_v22 = vsel %vm1365_vm5, %v2098_v14, %v2376_v3  ;;  %v2127_v27 = vrot.slane %v2126_v34, 1  ;;  %v2122_v6 = vadd.f32 %v2121_v8, %v2120_v61 }
 0x3e5   :  { %v2114_v46 = vadd.f32 %v2113_v62, %v2112_v43  ;;  %v1943_v7 = vmul.f32 %v3129_v19, %v1749_v5  ;;  %v2154_v11 = vadd.f32 %v2153_v25, %v1942_v44  ;;  %v1940_v15 = vmul.f32 %v3130_v13, %v1728_v29  ;;  %v3135_v25 = vld [vmem:[#allocation2 + $0x138] sm:$0xff] }
 0x3e6   :  { %v2136_v12 = vadd.f32 %v2135_v52, %v1939_v50  ;;  %v2110_v42 = vadd.f32 %v2109_v28, %v2108_v59  ;;  %v2132_v20 = vadd.f32 %v2131_v26, %v2130_v60  ;;  %v2378_v47 = vsel %vm1367_vm6, %v2104_v56, %v2377_v22  ;;  %v3134_v59 = vld [vmem:[#allocation2 + $0x108] sm:$0xff]  ;;  %v3136_v5 = vld [vmem:[#allocation2 + $0x118] sm:$0xff] }
 0x3e7   :  { %v2115_v63 = vrot.slane %v2114_v46, 1  ;;  %v2159_v55 = vrot.slane %v1943_v7, 4  ;;  %v2141_v37 = vrot.slane %v1940_v15, 4  ;;  %v2155_v30 = vrot.slane %v2154_v11, 2 }
 0x3e8   :  { %v1763_v0 = vpop.permute.xlu0 %1762  ;;  %v1735_v58 = vpop.permute.xlu1 %1734  ;;  %v2137_v4 = vrot.slane %v2136_v12, 2  ;;  %v2379_v24 = vsel %vm1369_vm7, %v2110_v42, %v2378_v47  ;;  %v2133_v18 = vrot.slane %v2132_v20, 1  ;;  %v2128_v49 = vadd.f32 %v2127_v27, %v2126_v34 }
 0x3e9   :  { %v2116_v23 = vadd.f32 %v2115_v63, %v2114_v46  ;;  %v1945_v9 = vmul.f32 %v3131_v32, %v1763_v0  ;;  %v2142_v31 = vadd.f32 %v2141_v37, %v1940_v15  ;;  %2417 = vst [vmem:[#allocation11 + $0x10] sm:$0xff] %v2379_v24  ;;  %2925 = vmatmul.mubr.f32.gmra.mrb[18].mxu0 %v2379_v24 }
 0x3ea   :  { %v1941_v21 = vmul.f32 %v3132_v33, %v1735_v58  ;;  %v2160_v36 = vadd.f32 %v2159_v55, %v1943_v7  ;;  %v2138_v17 = vadd.f32 %v2137_v4, %v2136_v12  ;;  %v2156_v48 = vadd.f32 %v2155_v30, %v2154_v11  ;;  %v3137_v55 = vld [vmem:[#allocation2 + $0x140] sm:$0xff] }
 0x3eb   :  { %v2143_v39 = vrot.slane %v2142_v31, 2  ;;  %v2171_v41 = vrot.slane %v1945_v9, 4  ;;  %v2380_v45 = vsel %vm1357_vm1, %v2122_v6, %v2116_v23  ;;  %v2134_v61 = vadd.f32 %v2133_v18, %v2132_v20  ;;  %v3138_v23 = vld [vmem:[#allocation2 + $0x128] sm:$0xff] }
 0x3ec   :  { %v1777_v16 = vpop.permute.xlu0 %1776  ;;  %v1756_v40 = vpop.permute.xlu1 %1755  ;;  %v2147_v38 = vrot.slane %v1941_v21, 4  ;;  %v2381_v60 = vsel %vm1359_vm2, %v2128_v49, %v2380_v45  ;;  %v2161_v14 = vrot.slane %v2160_v36, 2  ;;  %v2139_v28 = vrot.slane %v2138_v17, 1 }
 0x3ed   :  { %v1947_v51 = vmul.f32 %v3133_v35, %v1777_v16  ;;  %v2144_v53 = vadd.f32 %v2143_v39, %v2142_v31  ;;  %v1944_v43 = vmul.f32 %v3134_v59, %v1756_v40  ;;  %v2172_v57 = vadd.f32 %v2171_v41, %v1945_v9  ;;  %v3139_v41 = vld [vmem:[#allocation2 + $0x150] sm:$0xff] }
 0x3ee   :  { %v2148_v54 = vadd.f32 %v2147_v38, %v1941_v21  ;;  %v2157_v26 = vrot.slane %v2156_v48, 1  ;;  %v2382_v56 = vsel %vm1361_vm3, %v2134_v61, %v2381_v60  ;;  %v2162_v3 = vadd.f32 %v2161_v14, %v2160_v36  ;;  %v3140_v40 = vld [vmem:[#allocation2 + $0x130] sm:$0xff] }
 0x3ef   :  { %v2183_v44 = vrot.slane %v1947_v51, 4  ;;  %v2165_v10 = vrot.slane %v1944_v43, 4  ;;  %v2145_v46 = vrot.slane %v2144_v53, 1  ;;  %v2173_v11 = vrot.slane %v2172_v57, 2 }
 0x3f0   :  { %v1798_v2 = vpop.permute.xlu0 %1797  ;;  %v1770_v50 = vpop.permute.xlu1 %1769  ;;  %v2149_v62 = vrot.slane %v2148_v54, 2  ;;  %v2140_v8 = vadd.f32 %v2139_v28, %v2138_v17  ;;  %v2158_v32 = vadd.f32 %v2157_v26, %v2156_v48  ;;  %v3141_v26 = vld [vmem:[#allocation2 + $0x160] sm:$0xff] }
 0x3f1   :  { %v2184_v34 = vadd.f32 %v2183_v44, %v1947_v51  ;;  %v1950_v52 = vmul.f32 %v3135_v25, %v1798_v2  ;;  %v1946_v29 = vmul.f32 %v3136_v5, %v1770_v50  ;;  %v2166_v7 = vadd.f32 %v2165_v10, %v1944_v43 }
 0x3f2   :  { %v2150_v19 = vadd.f32 %v2149_v62, %v2148_v54  ;;  %v2146_v9 = vadd.f32 %v2145_v46, %v2144_v53  ;;  %v2174_v30 = vadd.f32 %v2173_v11, %v2172_v57  ;;  %v2383_v18 = vsel %vm1363_vm4, %v2140_v8, %v2382_v56 }
 0x3f3   :  { %v2201_v12 = vrot.slane %v1950_v52, 4  ;;  %v2177_v13 = vrot.slane %v1946_v29, 4  ;;  %v2167_v20 = vrot.slane %v2166_v7, 2  ;;  %v2185_v0 = vrot.slane %v2184_v34, 2 }
 0x3f4   :  { %v1805_v15 = vpop.permute.xlu0 %1804  ;;  %v1784_v42 = vpop.permute.xlu1 %1783  ;;  %v2151_v63 = vrot.slane %v2150_v19, 1  ;;  %v2384_v53 = vsel %vm1365_vm5, %v2146_v9, %v2383_v18  ;;  %v2163_v54 = vrot.slane %v2162_v3, 1  ;;  %v2175_v59 = vrot.slane %v2174_v30, 1 }
 0x3f5   :  { %v1951_v37 = vmul.f32 %v3137_v55, %v1805_v15  ;;  %v2202_v22 = vadd.f32 %v2201_v12, %v1950_v52  ;;  %v2178_v58 = vadd.f32 %v2177_v13, %v1946_v29  ;;  %v1948_v4 = vmul.f32 %v3138_v23, %v1784_v42  ;;  %v3142_v29 = vld [vmem:[#allocation2 + $0x148] sm:$0xff] }
 0x3f6   :  { %v2168_v47 = vadd.f32 %v2167_v20, %v2166_v7  ;;  %v2152_v31 = vadd.f32 %v2151_v63, %v2150_v19  ;;  %v2186_v17 = vadd.f32 %v2185_v0, %v2184_v34  ;;  %v2164_v46 = vadd.f32 %v2163_v54, %v2162_v3 }
 0x3f7   :  { %v2207_v27 = vrot.slane %v1951_v37, 4  ;;  %v2179_v24 = vrot.slane %v2178_v58, 2  ;;  %v2189_v6 = vrot.slane %v1948_v4, 4  ;;  %v2203_v36 = vrot.slane %v2202_v22, 2 }
 0x3f8   :  { %v1819_v33 = vpop.permute.xlu0 %1818  ;;  %v1791_v21 = vpop.permute.xlu1 %1790  ;;  %v2169_v38 = vrot.slane %v2168_v47, 1  ;;  %v2385_v60 = vsel %vm1367_vm6, %v2152_v31, %v2384_v53  ;;  %v2187_v28 = vrot.slane %v2186_v17, 1  ;;  %v2176_v19 = vadd.f32 %v2175_v59, %v2174_v30 }
 0x3f9   :  { %v2208_v39 = vadd.f32 %v2207_v27, %v1951_v37  ;;  %v1953_v16 = vmul.f32 %v3139_v41, %v1819_v33  ;;  %v1949_v45 = vmul.f32 %v3140_v40, %v1791_v21  ;;  %v2190_v49 = vadd.f32 %v2189_v6, %v1948_v4  ;;  %v3143_v37 = vld [vmem:[#allocation2 + $0x178] sm:$0xff]  ;;  %v3145_v40 = vld [vmem:[#allocation2 + $0x168] sm:$0xff] }
 0x3fa   :  { %v2180_v48 = vadd.f32 %v2179_v24, %v2178_v58  ;;  %v2204_v44 = vadd.f32 %v2203_v36, %v2202_v22  ;;  %v2170_v62 = vadd.f32 %v2169_v38, %v2168_v47  ;;  %v2386_v10 = vsel %vm1369_vm7, %v2158_v32, %v2385_v60  ;;  %v3144_v22 = vld [vmem:[#allocation2 + $0x158] sm:$0xff]  ;;  %v3146_v38 = vld [vmem:[#allocation2 + $0x180] sm:$0xff] }
 0x3fb   :  { %v2219_v35 = vrot.slane %v1953_v16, 4  ;;  %v2195_v51 = vrot.slane %v1949_v45, 4  ;;  %v2191_v43 = vrot.slane %v2190_v49, 2  ;;  %v2209_v2 = vrot.slane %v2208_v39, 2  ;;  %2418 = vst [vmem:[#allocation11 + $0x18] sm:$0xff] %v2386_v10  ;;  %2928 = vmatmul.mubr.f32.vlgmr.msra.gmra.mrb[6].mxu1 %v2386_v10 }
 0x3fc   :  { %v1833_v14 = vpop.permute.xlu0 %1832  ;;  %v1812_v57 = vpop.permute.xlu1 %1811  ;;  %v2181_v25 = vrot.slane %v2180_v48, 1  ;;  %2930 = vmatprep.mubr.msk.f32.mxu1 %vm3304_vm0, %v3305_v1  ;;  %v2205_v15 = vrot.slane %v2204_v44, 1  ;;  %v2387_v20 = vsel %vm1357_vm1, %v2170_v62, %v2164_v46  ;;  %v2188_v3 = vadd.f32 %v2187_v28, %v2186_v17 }
 0x3fd   :  { %v2220_v50 = vadd.f32 %v2219_v35, %v1953_v16  ;;  %v2196_v61 = vadd.f32 %v2195_v51, %v1949_v45  ;;  %v1955_v34 = vmul.f32 %v3141_v26, %v1833_v14  ;;  %v2192_v52 = vadd.f32 %v2191_v43, %v2190_v49 }
 0x3fe   :  { %v1952_v56 = vmul.f32 %v3142_v29, %v1812_v57  ;;  %v2210_v42 = vadd.f32 %v2209_v2, %v2208_v39  ;;  %v2182_v23 = vadd.f32 %v2181_v25, %v2180_v48  ;;  %v2206_v21 = vadd.f32 %v2205_v15, %v2204_v44  ;;  %v3147_v57 = vld [vmem:[#allocation2 + $0x190] sm:$0xff] }
 0x3ff   :  { %v2197_v5 = vrot.slane %v2196_v61, 2  ;;  %v2221_v7 = vrot.slane %v2220_v50, 2  ;;  %v2231_v11 = vrot.slane %v1955_v34, 4  ;;  %v2193_v4 = vrot.slane %v2192_v52, 1  ;;  %v3148_v2 = vld [vmem:[#allocation2 + $0x170] sm:$0xff] }
 0x400   :  { %v1854_v12 = vpop.permute.xlu0 %1853  ;;  %v1826_v13 = vpop.permute.xlu1 %1825  ;;  %v2213_v63 = vrot.slane %v1952_v56, 4  ;;  %v2211_v6 = vrot.slane %v2210_v42, 1  ;;  %v2388_v36 = vsel %vm1359_vm2, %v2176_v19, %v2387_v20 }
 0x401   :  { %v2198_v8 = vadd.f32 %v2197_v5, %v2196_v61  ;;  %v2232_v55 = vadd.f32 %v2231_v11, %v1955_v34  ;;  %v1958_v0 = vmul.f32 %v3143_v37, %v1854_v12  ;;  %v1954_v58 = vmul.f32 %v3144_v22, %v1826_v13 }
 0x402   :  { %v2214_v32 = vadd.f32 %v2213_v63, %v1952_v56  ;;  %v2222_v9 = vadd.f32 %v2221_v7, %v2220_v50  ;;  %v2194_v18 = vadd.f32 %v2193_v4, %v2192_v52  ;;  %v2389_v48 = vsel %vm1361_vm3, %v2182_v23, %v2388_v36  ;;  %v3150_v23 = vld [vmem:[#allocation2 + $0x1b0] sm:$0xff] }
 0x403   :  { %v2199_v47 = vrot.slane %v2198_v8, 1  ;;  %v2249_v27 = vrot.slane %v1958_v0, 4  ;;  %v2225_v30 = vrot.slane %v1954_v58, 4  ;;  %v2233_v39 = vrot.slane %v2232_v55, 2 }
 0x404   :  { %v1861_v31 = vpop.permute.xlu0 %1860  ;;  %v1840_v24 = vpop.permute.xlu1 %1839  ;;  %v2215_v33 = vrot.slane %v2214_v32, 2  ;;  %v2223_v35 = vrot.slane %v2222_v9, 1  ;;  %v2390_v10 = vsel %vm1363_vm4, %v2188_v3, %v2389_v48  ;;  %v2212_v5 = vadd.f32 %v2211_v6, %v2210_v42  ;;  %v3149_v42 = vld [vmem:[#allocation2 + $0x188] sm:$0xff]  ;;  %v3151_v6 = vld [vmem:[#allocation2 + $0x198] sm:$0xff] }
 0x405   :  { %v2250_v41 = vadd.f32 %v2249_v27, %v1958_v0  ;;  %v2226_v16 = vadd.f32 %v2225_v30, %v1954_v58  ;;  %v1956_v45 = vmul.f32 %v3145_v40, %v1840_v24  ;;  %v1959_v49 = vmul.f32 %v3146_v38, %v1861_v31 }
 0x406   :  { %v2216_v17 = vadd.f32 %v2215_v33, %v2214_v32  ;;  %v2200_v51 = vadd.f32 %v2199_v47, %v2198_v8  ;;  %v2234_v61 = vadd.f32 %v2233_v39, %v2232_v55  ;;  %v2391_v52 = vsel %vm1365_vm5, %v2194_v18, %v2390_v10  ;;  %v3153_v10 = vld [vmem:[#allocation2 + $0x1a8] sm:$0xff] }
 0x407   :  { %v2227_v53 = vrot.slane %v2226_v16, 2  ;;  %v2237_v54 = vrot.slane %v1956_v45, 4  ;;  %v2251_v14 = vrot.slane %v2250_v41, 2  ;;  %v2255_v34 = vrot.slane %v1959_v49, 4 }
 0x408   :  { %v1875_v59 = vpop.permute.xlu0 %1874  ;;  %v1847_v43 = vpop.permute.xlu1 %1846  ;;  %v2217_v60 = vrot.slane %v2216_v17, 1  ;;  %v2392_v46 = vsel %vm1367_vm6, %v2200_v51, %v2391_v52  ;;  %v2224_v7 = vadd.f32 %v2223_v35, %v2222_v9  ;;  %v2235_v37 = vrot.slane %v2234_v61, 1 }
 0x409   :  { %v1961_v44 = vmul.f32 %v3147_v57, %v1875_v59  ;;  %v1957_v50 = vmul.f32 %v3148_v2, %v1847_v43  ;;  %v2228_v28 = vadd.f32 %v2227_v53, %v2226_v16  ;;  %v2238_v62 = vadd.f32 %v2237_v54, %v1956_v45 }
 0x40a   :  { %v2218_v26 = vadd.f32 %v2217_v60, %v2216_v17  ;;  %v2252_v11 = vadd.f32 %v2251_v14, %v2250_v41  ;;  %v2393_v55 = vsel %vm1369_vm7, %v2206_v21, %v2392_v46  ;;  %v2256_v0 = vadd.f32 %v2255_v34, %v1959_v49  ;;  %v3152_v49 = vld [vmem:[#allocation2 + $0x1a0] sm:$0xff] }
 0x40b   :  { %v2243_v25 = vrot.slane %v1957_v50, 4  ;;  %v2229_v29 = vrot.slane %v2228_v28, 1  ;;  %v2239_v56 = vrot.slane %v2238_v62, 2  ;;  %v2267_v12 = vrot.slane %v1961_v44, 4  ;;  %2419 = vst [vmem:[#allocation11 + $0x20] sm:$0xff] %v2393_v55  ;;  %2931 = vmatmul.mubr.f32.gmra.mrb[8].mxu1 %v2393_v55 }
 0x40c   :  { %v1868_v19 = vpop.permute.xlu1 %1867  ;;  %v1903_v15 = vpop.permute.xlu0 %1902  ;;  %v2394_v8 = vsel %vm1357_vm1, %v2218_v26, %v2212_v5  ;;  %2933 = vmatprep.mubr.msk.f32.mxu1 %vm3304_vm0, %v3305_v1  ;;  %v2253_v9 = vrot.slane %v2252_v11, 1  ;;  %v2236_v36 = vadd.f32 %v2235_v37, %v2234_v61  ;;  %v2257_v39 = vrot.slane %v2256_v0, 2 }
 0x40d   :  { %v2244_v13 = vadd.f32 %v2243_v25, %v1957_v50  ;;  %v2230_v63 = vadd.f32 %v2229_v29, %v2228_v28  ;;  %v2240_v20 = vadd.f32 %v2239_v56, %v2238_v62  ;;  %v1960_v58 = vmul.f32 %v3149_v42, %v1868_v19 }
 0x40e   :  { %v1965_v4 = vmul.f32 %v3150_v23, %v1903_v15  ;;  %v2395_v30 = vsel %vm1359_vm2, %v2224_v7, %v2394_v8  ;;  %v2268_v24 = vadd.f32 %v2267_v12, %v1961_v44  ;;  %v2254_v54 = vadd.f32 %v2253_v9, %v2252_v11 }
 0x40f   :  { %v2245_v22 = vrot.slane %v2244_v13, 2  ;;  %v2241_v3 = vrot.slane %v2240_v20, 1  ;;  %v2261_v27 = vrot.slane %v1960_v58, 4  ;;  %v2396_v21 = vsel %vm1361_vm3, %v2230_v63, %v2395_v30 }
 0x410   :  { %v1882_v32 = vpop.permute.xlu1 %1881  ;;  %v2291_v40 = vrot.slane %v1965_v4, 4  ;;  %v2397_v35 = vsel %vm1363_vm4, %v2236_v36, %v2396_v21  ;;  %v2269_v51 = vrot.slane %v2268_v24, 2  ;;  %v2258_v43 = vadd.f32 %v2257_v39, %v2256_v0  ;;  %v2520_v0 = vpop.f32.mrb[0].mxu1 }
 0x411   :  { %v2246_v47 = vadd.f32 %v2245_v22, %v2244_v13  ;;  %v2242_v31 = vadd.f32 %v2241_v3, %v2240_v20  ;;  %v1962_v33 = vmul.f32 %v3151_v6, %v1882_v32  ;;  %v2262_v16 = vadd.f32 %v2261_v27, %v1960_v58  ;;  %v3154_v13 = vld [vmem:[#allocation2 + $0x1b8] sm:$0xff]  ;;  %v2867_v42 = vpop.f32.mrb[1].mxu1 }
 0x412   :  { %v2292_v44 = vadd.f32 %v2291_v40, %v1965_v4  ;;  %v2270_v34 = vadd.f32 %v2269_v51, %v2268_v24  ;;  %v2259_v52 = vrot.slane %v2258_v43, 1  ;;  %v2525_v21 = vpop.f32.mrb[2].mxu1 }
 0x413   :  { %v2247_v41 = vrot.slane %v2246_v47, 1  ;;  %v2273_v45 = vrot.slane %v1962_v33, 4  ;;  %v2263_v38 = vrot.slane %v2262_v16, 2  ;;  %v2398_v59 = vsel %vm1365_vm5, %v2242_v31, %v2397_v35 }
 0x414   :  { %v1889_v18 = vpop.permute.xlu1 %1888  ;;  %v2293_v56 = vrot.slane %v2292_v44, 2  ;;  %v2271_v8 = vrot.slane %v2270_v34, 1  ;;  %v2260_v63 = vadd.f32 %v2259_v52, %v2258_v43 }
 0x415   :  { %v2248_v17 = vadd.f32 %v2247_v41, %v2246_v47  ;;  %v1963_v48 = vmul.f32 %v3152_v49, %v1889_v18  ;;  %v2274_v53 = vadd.f32 %v2273_v45, %v1962_v33  ;;  %v2264_v60 = vadd.f32 %v2263_v38, %v2262_v16  ;;  %v2870_v41 = vpop.f32.mrb[3].mxu1 }
 0x416   :  { %v2294_v22 = vadd.f32 %v2293_v56, %v2292_v44  ;;  %v2272_v4 = vadd.f32 %v2271_v8, %v2270_v34 }
 0x417   :  { %v2279_v14 = vrot.slane %v1963_v48, 4  ;;  %v2399_v57 = vsel %vm1367_vm6, %v2248_v17, %v2398_v59  ;;  %v2275_v2 = vrot.slane %v2274_v53, 2  ;;  %v2265_v28 = vrot.slane %v2264_v60, 1  ;;  %v2530_v17 = vpop.f32.mrb[4].mxu1 }
 0x418   :  { %v1896_v50 = vpop.permute.xlu1 %1895  ;;  %v2400_v61 = vsel %vm1369_vm7, %v2254_v54, %v2399_v57  ;;  %v2295_v27 = vrot.slane %v2294_v22, 1  ;;  %v2873_v38 = vpop.f32.mrb[5].mxu1 }
 0x419   :  { %v2280_v62 = vadd.f32 %v2279_v14, %v1963_v48  ;;  %v1964_v26 = vmul.f32 %v3153_v10, %v1896_v50  ;;  %2420 = vst [vmem:[#allocation11 + $0x28] sm:$0xff] %v2400_v61  ;;  %2934 = vmatmul.mubr.f32.gmra.mrb[10].mxu1 %v2400_v61  ;;  %v2276_v25 = vadd.f32 %v2275_v2, %v2274_v53 }
 0x41a   :  { %2936 = vmatprep.mubr.msk.f32.mxu1 %vm3304_vm0, %v3305_v1  ;;  %v2266_v46 = vadd.f32 %v2265_v28, %v2264_v60  ;;  %v2296_v16 = vadd.f32 %v2295_v27, %v2294_v22 }
 0x41b   :  { %v2281_v5 = vrot.slane %v2280_v62, 2  ;;  %v2285_v29 = vrot.slane %v1964_v26, 4  ;;  %v2277_v7 = vrot.slane %v2276_v25, 1 }
 0x41c   :  { %v1910_v19 = vpop.permute.xlu1 %1909  ;;  %v2401_v1 = vsel %vm1357_vm1, %v2266_v46, %v2260_v63 }
 0x41d   :  { %v2282_v11 = vadd.f32 %v2281_v5, %v2280_v62  ;;  %v2286_v12 = vadd.f32 %v2285_v29, %v1964_v26  ;;  %v1966_v15 = vmul.f32 %v3154_v13, %v1910_v19  ;;  %v2278_v58 = vadd.f32 %v2277_v7, %v2276_v25 }
 0x41e   :  { %v2402_v30 = vsel %vm1359_vm2, %v2272_v4, %v2401_v1 }
 0x41f   :  { %v2283_v20 = vrot.slane %v2282_v11, 1  ;;  %v2287_v55 = vrot.slane %v2286_v12, 2  ;;  %v2297_v37 = vrot.slane %v1966_v15, 4  ;;  %v2403_v6 = vsel %vm1361_vm3, %v2278_v58, %v2402_v30 }
 0x421   :  { %v2288_v3 = vadd.f32 %v2287_v55, %v2286_v12  ;;  %v2298_v23 = vadd.f32 %v2297_v37, %v1966_v15  ;;  %v2284_v32 = vadd.f32 %v2283_v20, %v2282_v11 }
 0x423   :  { %v2289_v9 = vrot.slane %v2288_v3, 1  ;;  %v2299_v47 = vrot.slane %v2298_v23, 2  ;;  %v2404_v33 = vsel %vm1363_vm4, %v2284_v32, %v2403_v6 }
 0x425   :  { %v2290_v31 = vadd.f32 %v2289_v9, %v2288_v3  ;;  %v2300_v24 = vadd.f32 %v2299_v47, %v2298_v23 }
 0x427   :  { %v2301_v36 = vrot.slane %v2300_v24, 1  ;;  %v2405_v39 = vsel %vm1365_vm5, %v2290_v31, %v2404_v33 }
 0x428   :  { %v2406_v45 = vsel %vm1367_vm6, %v2296_v16, %v2405_v39 }
 0x429   :  { %v2302_v40 = vadd.f32 %v2301_v36, %v2300_v24 }
 0x42b   :  { %v2407_v18 = vsel %vm1369_vm7, %v2302_v40, %v2406_v45 }
 0x42c   :  { %2421 = vst [vmem:[#allocation11 + $0x30] sm:$0xff] %v2407_v18  ;;  %2937 = vmatmul.mubr.f32.gmra.mrb[12].mxu1 %v2407_v18 }
 0x42d   :  { %3254 = shalt.err (!%p3251_p8)
}
 0x42e   :  { %s3255_s5 = scalar_lea.hbm %s4231_s7, 896 }
 0x42f   :  { %p3256_p9 = scmp.ne.s32.totalorder %s4231_s7, %s3255_s5  ;;  %p3259_p10 = scmp.lt.u32.totalorder %s3255_s5, %s4231_s7 }
 0x431   :  { %p3261_p11 = pnand %p3259_p10, %p3256_p9 }
 0x433   :  { %3264 = shalt.err (!%p3261_p11)
}
 0x434   :  { %2691 = dma.vmem_to_hbm [thread:$0]  %s2686_s10, 896, %s4231_s7, [#allocation12], %s3299_s21, %s3299_s21, %s3300_s22  }
 0x435   :  { %s3308_s7 = smov [#allocation10]  }
 0x436   :  { %s2673_s24 = sshll.u32 %s3308_s7, 4  ;;  %s2674_s24 = int_to_ptr.vmem [resolvable:$true] %s2673_s24 }
 0x437   :  { %s3265_s25 = scalar_lea.vmem %s2674_s24, 896  ;;  %p3270_p13 = scmp.lt.s32.totalorder %s2674_s24, %s2674_s24 }
 0x438   :  { %p3266_p12 = scmp.ne.s32.totalorder %s2674_s24, %s3265_s25  ;;  %p3271_p0 = scmp.lt.s32.totalorder %s3265_s25, %s3265_s25 }
 0x43a   :  { %p3272_p1 = por %p3271_p0, %p3270_p13 }
 0x43c   :  { %p3273_p2 = pnand %p3272_p1, %p3266_p12 }
 0x495   :  { %v2620_v49 = vpop.f32.mrb[14].mxu0 }
 0x496   :  { %v2621_v48 = vadd.f32 %v2620_v49, %v2520_v0  ;;  %v2920_v35 = vpop.f32.mrb[15].mxu0 }
 0x498   :  { %3078 = vtanh.f32 %v2621_v48 }
 0x4a2   :  { %v3079_v51 = vpop.eup %3078 }
 0x4a3   :  { %2661 = vst [vmem:[#allocation10] sm:$0xff] %v3079_v51 }
 0x4a7   :  { %v2625_v53 = vpop.f32.mrb[16].mxu0 }
 0x4a8   :  { %v2626_v54 = vadd.f32 %v2625_v53, %v2525_v21  ;;  %v2923_v59 = vpop.f32.mrb[17].mxu0 }
 0x4aa   :  { %3080 = vtanh.f32 %v2626_v54 }
 0x4b4   :  { %v3081_v43 = vpop.eup %3080 }
 0x4b5   :  { %2662 = vst [vmem:[#allocation10 + $0x8] sm:$0xff] %v3081_v43 }
 0x4bc   :  { %v2630_v60 = vpop.f32.mrb[18].mxu0 }
 0x4bd   :  { %v2631_v14 = vadd.f32 %v2630_v60, %v2530_v17  ;;  %v2926_v57 = vpop.f32.mrb[19].mxu0 }
 0x4bf   :  { %3082 = vtanh.f32 %v2631_v14 }
 0x4c9   :  { %v3083_v44 = vpop.eup %3082 }
 0x4ca   :  { %2663 = vst [vmem:[#allocation10 + $0x10] sm:$0xff] %v3083_v44 }
 0x4ce   :  { %v2635_v2 = vpop.f32.mrb[6].mxu1 }
 0x4cf   :  { %3084 = vtanh.f32 %v2635_v2  ;;  %v2929_v50 = vpop.f32.mrb[7].mxu1 }
 0x4d9   :  { %v3085_v61 = vpop.eup %3084 }
 0x4da   :  { %2664 = vst [vmem:[#allocation10 + $0x18] sm:$0xff] %v3085_v61 }
 0x4de   :  { %v2640_v28 = vpop.f32.mrb[8].mxu1 }
 0x4df   :  { %3086 = vtanh.f32 %v2640_v28  ;;  %v2932_v62 = vpop.f32.mrb[9].mxu1 }
 0x4e9   :  { %v3087_v26 = vpop.eup %3086 }
 0x4ea   :  { %2665 = vst [vmem:[#allocation10 + $0x20] sm:$0xff] %v3087_v26 }
 0x4ec   :  { %v2645_v10 = vpop.f32.mrb[10].mxu1 }
 0x4ed   :  { %3088 = vtanh.f32 %v2645_v10  ;;  %v2935_v34 = vpop.f32.mrb[11].mxu1 }
 0x4f7   :  { %v3089_v25 = vpop.eup %3088 }
 0x4f8   :  { %2666 = vst [vmem:[#allocation10 + $0x28] sm:$0xff] %v3089_v25 }
 0x4ff   :  { %v2650_v52 = vpop.f32.mrb[12].mxu1 }
 0x500   :  { %3090 = vtanh.f32 %v2650_v52  ;;  %v2938_v5 = vpop.f32.mrb[13].mxu1 }
 0x50a   :  { %v3091_v29 = vpop.eup %3090 }
 0x50b   :  { %2667 = vst [vmem:[#allocation10 + $0x30] sm:$0xff] %v3091_v29 }
 0x50c   :  { %3276 = shalt.err (!%p3273_p2)
}
 0x50d   :  { %s3277_s12 = scalar_lea.hbm %s4230_s6, 896 }
 0x50e   :  { %p3278_p3 = scmp.ne.s32.totalorder %s4230_s6, %s3277_s12  ;;  %p3281_p4 = scmp.lt.u32.totalorder %s3277_s12, %s4230_s6 }
 0x510   :  { %p3283_p5 = pnand %p3281_p4, %p3278_p3 }
 0x512   :  { %3286 = shalt.err (!%p3283_p5)
}
 0x513   :  { %2679 = dma.vmem_to_hbm [thread:$0]  %s2674_s24, 896, %s4230_s6, [#allocation4], %s3299_s21, %s3299_s21, %s3300_s22  }
 0x514   :  { %3293 = dma.done.wait [#allocation4], 896  }
 0x515   :  { %3294 = vsyncadd [#allocation4], 4294966400 }
 0x516   :  { %3295 = dma.done.wait [#allocation12], 896  }
 0x517   :  { %3296 = vsyncadd [#allocation12], 4294966400 }
 0x518   :  { %2706 = vsyncpa [#allocation3], 1 }
 0x519   :  { %2707 = vsyncpa [#allocation6], 1 }
 0x51a   :  { %2708 = vsyncpa [#allocation9], 1 }
 0x51b   :  { %2709 = vsyncpa [#allocation4], 1 }
 0x51c   :  { %2710 = vsyncpa [#allocation12], 1 }

</bundles_post_ra>
